<compile_context>
chip_gen: v7x
topology: tpu7x:2x2x1
jax: 0.10.0
libtpu: 0.0.40
codegen_flags: <defaults>
</compile_context>

<pallas_src>
import functools

import jax
import jax.numpy as jnp
from jax.experimental import pallas as pl
from jax.experimental.pallas import tpu as pltpu

LANE = 128
SUBLANE = 8


def _round_up(v, m):
    return ((v + m - 1) // m) * m


# --------------------------------------------------------------------------------------
# Kernel 1: one GraphConv layer
#   h = relu( (1/deg) * (A01 @ x) @ W_rel + x @ W_root + b )
# grid = (row tiles, N-contraction tiles); f32 VMEM accumulator holds A01 @ x over k.
# x is VMEM-resident (block-invariant spec); both the k-chunk and the row tile are sliced
# from it in-kernel, so only the adjacency is streamed per step.
# --------------------------------------------------------------------------------------
def graph_conv_kernel(a_ref, x_ref, inv_deg_ref, w_ref, b_ref, h_ref, acc_ref, *, tm, tk):
    i = pl.program_id(0)
    k = pl.program_id(1)

    @pl.when(k == 0)
    def _():
        acc_ref[...] = jnp.zeros_like(acc_ref)

    # bf16 0/1 adjacency tile x resident bf16 activations -> f32 accumulate (MXU-native).
    col0 = pl.multiple_of(k * tk, tk)
    acc_ref[...] += jnp.dot(a_ref[...], x_ref[pl.ds(col0, tk), :],
                            preferred_element_type=jnp.float32)

    @pl.when(k == pl.num_programs(1) - 1)
    def _():
        row0 = pl.multiple_of(i * tm, tm)
        x_root = x_ref[pl.ds(row0, tm), :]
        # exact mean normalization: neighbor-sum * per-row f32 1/deg.
        agg = (acc_ref[...] * inv_deg_ref[...]).astype(jnp.bfloat16)
        # Fused rel/root projection (bf16 operands, f32 accumulate):
        #   concat([agg, x_root]) @ vstack([W_rel, W_root]) + b
        # (On v5e's 128-wide MXU two separate dots would be marginally better; fused wins on v6e/v7x.)
        feats = jnp.concatenate([agg, x_root], axis=-1)
        h = jnp.dot(feats, w_ref[...], preferred_element_type=jnp.float32) + b_ref[...]
        h_ref[...] = jnp.maximum(h, 0.0).astype(h_ref.dtype)


def _graph_conv(a01, x_bf16, inv_deg, w_stacked, b, *, tm, tk, n_p, fin_p, h_p):
    grid = (n_p // tm, n_p // tk)
    kernel = functools.partial(graph_conv_kernel, tm=tm, tk=tk)
    return pl.pallas_call(
        kernel,
        out_shape=jax.ShapeDtypeStruct((n_p, h_p), jnp.bfloat16),
        grid=grid,
        in_specs=[
            pl.BlockSpec((tm, tk), lambda i, k: (i, k)),          # A01 (bf16) - dominant stream
            pl.BlockSpec((n_p, fin_p), lambda i, k: (0, 0)),      # x resident in VMEM (bf16)
            pl.BlockSpec((tm, 1), lambda i, k: (i, 0)),           # per-row 1/deg (f32)
            pl.BlockSpec((2 * fin_p, h_p), lambda i, k: (0, 0)),  # stacked [W_rel; W_root] (bf16)
            pl.BlockSpec((1, h_p), lambda i, k: (0, 0)),          # bias (f32)
        ],
        out_specs=pl.BlockSpec((tm, h_p), lambda i, k: (i, 0)),
        scratch_shapes=[pltpu.VMEM((tm, fin_p), jnp.float32)],
        compiler_params=pltpu.CompilerParams(
            dimension_semantics=("parallel", "arbitrary")),
    )(a01, x_bf16, inv_deg, w_stacked, b)


# --------------------------------------------------------------------------------------
# Kernel 2: global_mean_pool + lin_out, single grid step (small B, everything fits VMEM).
#   out = ((pool01 @ h) * inv_count) @ Wo + bo
# --------------------------------------------------------------------------------------
def pool_linear_kernel(pool_ref, inv_cnt_ref, h_ref, wo_ref, bo_ref, out_ref):
    pooled = jnp.dot(pool_ref[...], h_ref[...], preferred_element_type=jnp.float32)
    pooled = pooled * inv_cnt_ref[...]
    out_ref[...] = (jnp.dot(pooled, wo_ref[...],
                            preferred_element_type=jnp.float32) + bo_ref[...])


def _pool_linear(pool01, inv_cnt, h, wo, bo, *, n_p, b_p, h_p, out_p):
    return pl.pallas_call(
        pool_linear_kernel,
        out_shape=jax.ShapeDtypeStruct((b_p, out_p), jnp.float32),
        grid=(1,),
        in_specs=[
            pl.BlockSpec((b_p, n_p), lambda k: (0, 0)),    # 0/1 pool matrix (bf16)
            pl.BlockSpec((b_p, 1), lambda k: (0, 0)),      # 1/count (f32)
            pl.BlockSpec((n_p, h_p), lambda k: (0, 0)),    # h (bf16)
            pl.BlockSpec((h_p, out_p), lambda k: (0, 0)),  # Wo (f32)
            pl.BlockSpec((1, out_p), lambda k: (0, 0)),    # bo (f32)
        ],
        out_specs=pl.BlockSpec((b_p, out_p), lambda k: (0, 0)),
        compiler_params=pltpu.CompilerParams(
            dimension_semantics=("arbitrary",)),
    )(pool01, inv_cnt, h, wo, bo)


# --------------------------------------------------------------------------------------
# Wrapper: exact 0/1 bf16 adjacency, f32 1/deg, bf16 activations/weights, padding, calls.
# --------------------------------------------------------------------------------------
def test_model_forward(x, edge_index, batch, params, num_graphs, *, tm=256, tk=512):
    N, F = x.shape
    H = params["w1_rel"].shape[1]
    OUT = params["wo"].shape[1]
    B = num_graphs

    n_p = _round_up(N, max(tm, tk))
    assert n_p % tm == 0 and n_p % tk == 0
    f_p = _round_up(F, LANE)
    h_p = _round_up(H, LANE)
    out_p = _round_up(OUT, LANE)
    b_p = _round_up(B, SUBLANE)

    # Dense adjacency (PyG convention: messages flow src -> dst), built directly in bf16 as
    # exact 0/1 (edge-multiplicity) values; the mean normalization is applied in-kernel via
    # a per-row f32 1/deg, so nothing lossy is stored in bf16.
    src, dst = edge_index[0], edge_index[1]
    adj01 = jnp.zeros((n_p, n_p), jnp.bfloat16).at[dst, src].add(
        jnp.ones(src.shape, jnp.bfloat16))
    deg = jnp.sum(adj01, axis=1, keepdims=True, dtype=jnp.float32)
    inv_deg = 1.0 / jnp.maximum(deg, 1.0)

    # Node features: zero-pad to lane width, pre-cast to bf16 (padded nodes never contribute).
    xp = jnp.zeros((n_p, f_p), jnp.bfloat16).at[:N, :F].set(x.astype(jnp.bfloat16))

    # global-mean-pool: exact 0/1 membership matrix (bf16) + f32 1/count scale.
    batch_p = jnp.full((n_p,), -1, jnp.int32).at[:N].set(batch)
    one_hot = batch_p[None, :] == jnp.arange(b_p)[:, None]
    pool01 = one_hot.astype(jnp.bfloat16)
    counts = jnp.sum(one_hot, axis=1, keepdims=True).astype(jnp.float32)
    inv_cnt = 1.0 / jnp.maximum(counts, 1.0)

    def pad2(w, r, c, dtype):
        return jnp.zeros((r, c), dtype).at[:w.shape[0], :w.shape[1]].set(w.astype(dtype))

    # Pre-stack [W_rel; W_root] (bf16) so each layer's epilogue is one MXU-native projection.
    w1 = jnp.concatenate([pad2(params["w1_rel"], f_p, h_p, jnp.bfloat16),
                          pad2(params["w1_root"], f_p, h_p, jnp.bfloat16)], axis=0)
    b1 = pad2(params["b1"].reshape(1, -1), 1, h_p, jnp.float32)
    w2 = jnp.concatenate([pad2(params["w2_rel"], h_p, h_p, jnp.bfloat16),
                          pad2(params["w2_root"], h_p, h_p, jnp.bfloat16)], axis=0)
    b2 = pad2(params["b2"].reshape(1, -1), 1, h_p, jnp.float32)
    wo = pad2(params["wo"], h_p, out_p, jnp.float32)
    bo = pad2(params["bo"].reshape(1, -1), 1, out_p, jnp.float32)

    h = _graph_conv(adj01, xp, inv_deg, w1, b1, tm=tm, tk=tk, n_p=n_p, fin_p=f_p, h_p=h_p)
    h = _graph_conv(adj01, h, inv_deg, w2, b2, tm=tm, tk=tk, n_p=n_p, fin_p=h_p, h_p=h_p)
    # dropout: identity in eval mode (training=False).
    out = _pool_linear(pool01, inv_cnt, h, wo, bo, n_p=n_p, b_p=b_p, h_p=h_p, out_p=out_p)
    return out[:B, :OUT]


# --------------------------------------------------------------------------------------
# Parameter init (PyTorch Linear-style uniform), weights stored as (in, out).
# --------------------------------------------------------------------------------------
def init_params(key, num_node_features, hidden_channels, out_features=24):
    F, H, O = num_node_features, hidden_channels, out_features
    ks = jax.random.split(key, 8)

    def lin_w(k, fan_in, fan_out):
        bound = 1.0 / jnp.sqrt(fan_in)
        return jax.random.uniform(k, (fan_in, fan_out), jnp.float32, -bound, bound)

    def lin_b(k, fan_in, fan_out):
        bound = 1.0 / jnp.sqrt(fan_in)
        return jax.random.uniform(k, (fan_out,), jnp.float32, -bound, bound)

    return {
        "w1_rel":  lin_w(ks[0], F, H),
        "w1_root": lin_w(ks[1], F, H),
        "b1":      lin_b(ks[2], F, H),
        "w2_rel":  lin_w(ks[3], H, H),
        "w2_root": lin_w(ks[4], H, H),
        "b2":      lin_b(ks[5], H, H),
        "wo":      lin_w(ks[6], H, O),
        "bo":      lin_b(ks[7], H, O),
    }


# --------------------------------------------------------------------------------------
# Pure-JAX reference (f32, dense) for a numerical sanity check.
# --------------------------------------------------------------------------------------
def reference_forward(x, edge_index, batch, params, num_graphs):
    N = x.shape[0]
    src, dst = edge_index[0], edge_index[1]
    adj = jnp.zeros((N, N), jnp.float32).at[dst, src].add(1.0)
    deg = jnp.sum(adj, axis=1, keepdims=True)
    a = adj / jnp.maximum(deg, 1.0)
    h = jnp.maximum((a @ x) @ params["w1_rel"] + params["b1"] + x @ params["w1_root"], 0.0)
    h = jnp.maximum((a @ h) @ params["w2_rel"] + params["b2"] + h @ params["w2_root"], 0.0)
    one_hot = (batch[None, :] == jnp.arange(num_graphs)[:, None]).astype(jnp.float32)
    pool = one_hot / jnp.maximum(one_hot.sum(1, keepdims=True), 1.0)
    return (pool @ h) @ params["wo"] + params["bo"]


if __name__ == "__main__":
    key = jax.random.PRNGKey(0)
    k_x, k_src, k_dst, k_p = jax.random.split(key, 4)

    # small batched graph: 300 nodes, 2 graphs (150 nodes each), 8 features, hidden=32, out=24
    N, F, H, OUT, B = 300, 8, 32, 24, 2
    npg = N // B
    x = jax.random.normal(k_x, (N, F), jnp.float32)

    E = 1200
    src = jax.random.randint(k_src, (E,), 0, N)
    offs = jax.random.randint(k_dst, (E,), 1, npg)
    dst = (src // npg) * npg + (src % npg + offs) % npg      # edges stay within each graph
    edge_index = jnp.stack([src, dst], axis=0).astype(jnp.int32)
    batch = (jnp.arange(N) // npg).astype(jnp.int32)

    params = init_params(k_p, F, H, OUT)

    out = test_model_forward(x, edge_index, batch, params, num_graphs=B)
    jax.block_until_ready(out)
    assert out.shape == (B, OUT) and out.dtype == jnp.float32
    assert bool(jnp.all(jnp.isfinite(out)))

    ref = reference_forward(x, edge_index, batch, params, num_graphs=B)
    rel_err = float(jnp.max(jnp.abs(out - ref))) / (float(jnp.max(jnp.abs(ref))) + 1e-6)
    assert rel_err < 5e-2, f"mismatch vs reference: rel-max-err={rel_err:.3e}"

    print("KERNEL_OK")
</pallas_src>

<mosaic_0001>
module attributes {stable_mosaic.version = 11 : i64} {
  func.func @graph_conv_kernel(%arg0: i32, %arg1: i32, %arg2: memref<256x512xbf16, #tpu.memory_space<vmem>>, %arg3: memref<512x128xbf16, #tpu.memory_space<vmem>>, %arg4: memref<256x1xf32, #tpu.memory_space<vmem>>, %arg5: memref<256x128xbf16, #tpu.memory_space<vmem>>, %arg6: memref<1x128xf32, #tpu.memory_space<vmem>>, %arg7: memref<256x128xbf16, #tpu.memory_space<vmem>>, %arg8: memref<256x128xf32, #tpu.memory_space<vmem>>) attributes {dimension_semantics = [#tpu.dimension_semantics<parallel>, #tpu.dimension_semantics<arbitrary>], iteration_bounds = array<i64: 2, 1>, scalar_prefetch = 0 : i64, scratch_operands = 1 : i64, tpu.core_type = #tpu.core_type<tc>, window_params = [{transform_indices = @transform_0, window_bounds = array<i64: 256, 512>}, {pipeline_mode = #tpu.pipeline_mode<synchronous>, transform_indices = @transform_1, window_bounds = array<i64: 512, 128>}, {transform_indices = @transform_2, window_bounds = array<i64: 256, 1>}, {pipeline_mode = #tpu.pipeline_mode<synchronous>, transform_indices = @transform_3, window_bounds = array<i64: 256, 128>}, {pipeline_mode = #tpu.pipeline_mode<synchronous>, transform_indices = @transform_4, window_bounds = array<i64: 1, 128>}, {transform_indices = @transform_5, window_bounds = array<i64: 256, 128>}]} {
    %c0_i32 = arith.constant 0 : i32
    %0 = arith.cmpi eq, %arg1, %c0_i32 : i32
    %1 = arith.extui %0 : i1 to i32
    %c0_i32_0 = arith.constant 0 : i32
    %2 = arith.cmpi ne, %1, %c0_i32_0 : i32
    scf.if %2 {
      %cst_9 = arith.constant 0.000000e+00 : f32
      %15 = vector.broadcast %cst_9 : f32 to vector<256x128xf32>
      %c0_10 = arith.constant 0 : index
      %c0_11 = arith.constant 0 : index
      %16 = vector.load %arg8[%c0_10, %c0_11] : memref<256x128xf32, #tpu.memory_space<vmem>>, vector<256x128xf32>
      tpu.vector_store %arg8[%c0_10, %c0_11], %15 {strides = array<i32>} : memref<256x128xf32, #tpu.memory_space<vmem>>, vector<256x128xf32>,
    } else {
    }
    %c512_i32 = arith.constant 512 : i32
    %3 = arith.muli %arg1, %c512_i32 : i32
    %4 = tpu.assume_multiple %3, 512 : i32
    %c0 = arith.constant 0 : index
    %c0_1 = arith.constant 0 : index
    %5 = vector.load %arg8[%c0, %c0_1] : memref<256x128xf32, #tpu.memory_space<vmem>>, vector<256x128xf32>
    %c0_2 = arith.constant 0 : index
    %c0_3 = arith.constant 0 : index
    %6 = vector.load %arg2[%c0_2, %c0_3] : memref<256x512xbf16, #tpu.memory_space<vmem>>, vector<256x512xbf16>
    %7 = arith.index_cast %4 : i32 to index
    %c0_4 = arith.constant 0 : index
    %8 = vector.load %arg3[%7, %c0_4] : memref<512x128xbf16, #tpu.memory_space<vmem>>, vector<512x128xbf16>
    %cst = arith.constant dense<0.000000e+00> : vector<256x128xf32>
    %9 = tpu.matmul %6, %8, %cst {dimension_numbers = #tpu.dot_dimension_numbers<[1], [0], [0], [1], [0, 0, 1, 1], [], []>} : vector<256x512xbf16>, vector<512x128xbf16>, vector<256x128xf32> -> vector<256x128xf32>
    %10 = arith.addf %5, %9 : vector<256x128xf32>
    %c0_5 = arith.constant 0 : index
    %c0_6 = arith.constant 0 : index
    %11 = vector.load %arg8[%c0_5, %c0_6] : memref<256x128xf32, #tpu.memory_space<vmem>>, vector<256x128xf32>
    tpu.vector_store %arg8[%c0_5, %c0_6], %10 {strides = array<i32>} : memref<256x128xf32, #tpu.memory_space<vmem>>, vector<256x128xf32>,
    %c0_i32_7 = arith.constant 0 : i32
    %12 = arith.cmpi eq, %arg1, %c0_i32_7 : i32
    %13 = arith.extui %12 : i1 to i32
    %c0_i32_8 = arith.constant 0 : i32
    %14 = arith.cmpi ne, %13, %c0_i32_8 : i32
    scf.if %14 {
      %c256_i32 = arith.constant 256 : i32
      %15 = arith.muli %arg0, %c256_i32 : i32
      %16 = tpu.assume_multiple %15, 256 : i32
      %17 = arith.index_cast %16 : i32 to index
      %c0_9 = arith.constant 0 : index
      %18 = vector.load %arg3[%17, %c0_9] : memref<512x128xbf16, #tpu.memory_space<vmem>>, vector<256x128xbf16>
      %c0_10 = arith.constant 0 : index
      %c0_11 = arith.constant 0 : index
      %19 = vector.load %arg8[%c0_10, %c0_11] : memref<256x128xf32, #tpu.memory_space<vmem>>, vector<256x128xf32>
      %c0_12 = arith.constant 0 : index
      %c0_13 = arith.constant 0 : index
      %20 = vector.load %arg4[%c0_12, %c0_13] : memref<256x1xf32, #tpu.memory_space<vmem>>, vector<256x1xf32>
      %21 = vector.broadcast %20 : vector<256x1xf32> to vector<256x128xf32>
      %22 = arith.mulf %19, %21 : vector<256x128xf32>
      %23 = arith.truncf %22 : vector<256x128xf32> to vector<256x128xbf16>
      %24 = tpu.concatenate %23, %18 in 1 : vector<256x128xbf16>, vector<256x128xbf16> -> vector<256x256xbf16>
      %c0_14 = arith.constant 0 : index
      %c0_15 = arith.constant 0 : index
      %25 = vector.load %arg5[%c0_14, %c0_15] : memref<256x128xbf16, #tpu.memory_space<vmem>>, vector<256x128xbf16>
      %cst_16 = arith.constant dense<0.000000e+00> : vector<256x128xf32>
      %26 = tpu.matmul %24, %25, %cst_16 {dimension_numbers = #tpu.dot_dimension_numbers<[1], [0], [0], [1], [0, 0, 1, 1], [], []>} : vector<256x256xbf16>, vector<256x128xbf16>, vector<256x128xf32> -> vector<256x128xf32>
      %c0_17 = arith.constant 0 : index
      %c0_18 = arith.constant 0 : index
      %27 = vector.load %arg6[%c0_17, %c0_18] : memref<1x128xf32, #tpu.memory_space<vmem>>, vector<1x128xf32>
      %28 = vector.broadcast %27 : vector<1x128xf32> to vector<256x128xf32>
      %29 = arith.addf %26, %28 : vector<256x128xf32>
      %cst_19 = arith.constant 0.000000e+00 : f32
      %30 = vector.broadcast %cst_19 : f32 to vector<256x128xf32>
      %31 = arith.maximumf %29, %30 : vector<256x128xf32>
      %32 = arith.truncf %31 : vector<256x128xf32> to vector<256x128xbf16>
      %c0_20 = arith.constant 0 : index
      %c0_21 = arith.constant 0 : index
      %33 = vector.load %arg7[%c0_20, %c0_21] : memref<256x128xbf16, #tpu.memory_space<vmem>>, vector<256x128xbf16>
      tpu.vector_store %arg7[%c0_20, %c0_21], %32 {strides = array<i32>} : memref<256x128xbf16, #tpu.memory_space<vmem>>, vector<256x128xbf16>,
    } else {
    }
    return
  }
  func.func @transform_0(%arg0: i32, %arg1: i32) -> (i32, i32) {
    %c0_i32 = arith.constant 0 : i32
    return %arg0, %arg1 : i32, i32
  }
  func.func @transform_1(%arg0: i32, %arg1: i32) -> (i32, i32) {
    %c0_i32 = arith.constant 0 : i32
    %c0_i32_0 = arith.constant 0 : i32
    %c0_i32_1 = arith.constant 0 : i32
    return %c0_i32, %c0_i32_0 : i32, i32
  }
  func.func @transform_2(%arg0: i32, %arg1: i32) -> (i32, i32) {
    %c0_i32 = arith.constant 0 : i32
    %c0_i32_0 = arith.constant 0 : i32
    return %arg0, %c0_i32 : i32, i32
  }
  func.func @transform_3(%arg0: i32, %arg1: i32) -> (i32, i32) {
    %c0_i32 = arith.constant 0 : i32
    %c0_i32_0 = arith.constant 0 : i32
    %c0_i32_1 = arith.constant 0 : i32
    return %c0_i32, %c0_i32_0 : i32, i32
  }
  func.func @transform_4(%arg0: i32, %arg1: i32) -> (i32, i32) {
    %c0_i32 = arith.constant 0 : i32
    %c0_i32_0 = arith.constant 0 : i32
    %c0_i32_1 = arith.constant 0 : i32
    return %c0_i32, %c0_i32_0 : i32, i32
  }
  func.func @transform_5(%arg0: i32, %arg1: i32) -> (i32, i32) {
    %c0_i32 = arith.constant 0 : i32
    %c0_i32_0 = arith.constant 0 : i32
    return %arg0, %c0_i32 : i32, i32
  }
}

</mosaic_0001>

<bundles_post_ra>
// kernel: tpu_custom_call.1
= control target key start
LH: loop header
LB: loop body
LE: loop exit
PB: predicated region body
PF: predicated region fallthrough
CT: control target
= control target key end

     0   :  { %10 = vsyncpa [#allocation4], 0  ;;  %s4036_s0 = inlined_call_operand.hbm [shape: bf16[512,512], index: 0, kind: input, shape index: {}]   ;;  %s4037_s1 = inlined_call_operand.vmem [shape: bf16[512,128], index: 1, kind: input, shape index: {}]   ;;  %s4038_s2 = inlined_call_operand.vmem [shape: f32[512,1], index: 2, kind: input, shape index: {}]   ;;  %s4039_s3 = inlined_call_operand.vmem [shape: bf16[256,128], index: 3, kind: input, shape index: {}]   ;;  %s4040_s4 = inlined_call_operand.vmem [shape: f32[1,128], index: 4, kind: input, shape index: {}]   ;;  %s4041_s5 = inlined_call_operand.hbm [shape: bf16[512,128], index: 5, kind: output, shape index: {}]  }
   0x1   :  { %12 = vsyncpa [#allocation4 + $0x1], 0 }
   0x2   :  { %13 = vsyncpa [#allocation5], 0 }
   0x3   :  { %15 = vsyncpa [#allocation5 + $0x1], 0  ;;  %s3438_s18 = smov 0   ;;  %s3440_s19 = smov 0  }
   0x4   :  { %s3442_s20 = smov 0   ;;  %s3444_s21 = smov 0  }
   0x5   :  { %s3446_s22 = smov 0   ;;  %s3448_s23 = smov 0  }
   0x6 LB: > { %s2395_s24 = sadd.s32 4294967295, %s3399_s23   ;;  %s2396_s25 = sadd.s32 4294967294, %s3399_s23   ;;  %s3399_s23 = sphi %s3448_s23, %s21_s23   ;;  %s3395_s22 = sphi %s3446_s22, %s4056_s22   ;;  %s3391_s21 = sphi %s3444_s21, %s4055_s21   ;;  %s3387_s20 = sphi %s3442_s20, %s4054_s20   ;;  %s3383_s19 = sphi %s3440_s19, %s4053_s19   ;;  %s3379_s18 = sphi %s3438_s18, %s4052_s18  }
   0x7   : > { %s33_s26 = sadd.s32 1, %s3395_s22  ;;  %s42_s27 = sadd.s32 1, %s3387_s20 }
   0x8   : > { %p35_p0 = scmp.ge.s32.totalorder %s33_s26, 2  ;;  %p49_p1 = scmp.ne.s32.totalorder %s3387_s20, %s3383_s19 }
   0x9   : > { %p50_p2 = scmp.eq.s32.totalorder %s3399_s23, 0  ;;  %p55_p3 = scmp.ne.s32.totalorder %s3383_s19, %s3379_s18 }
   0xa   : > { %s4058_s26 = smov (%p35_p0, %s33_s26), 0  ;;  %p56_p5 = scmp.eq.s32.totalorder %s2395_s24, 0 }
   0xb   : > { %p3479_p4 = por %p50_p2, %p49_p1  ;;  %s37_s29 = ssub.s32 %s3395_s22, %s4058_s26 }
   0xc   : > { %p168_p6 = scmp.eq.s32.totalorder %s2395_s24, 1  ;;  %p40_p7 = scmp.eq.s32.totalorder %s37_s29, 0 }
   0xd   : > { %p3485_p8 = por %p56_p5, %p55_p3  ;;  %p174_p10 = scmp.eq.s32.totalorder %s2396_s25, 1 }
   0xe   : > { %p3489_p9 = por %p168_p6, %p49_p1  ;;  %p3070_p13 = scmp.lt.s32.totalorder %s3399_s23, 2 }
   0xf   : > { %s3494_s7 = scalar_select %p40_p7, %s3387_s20, %s42_s27  }
  0x10   : > { %s4045_s6 = scalar_select %p3489_p9, 1, 0 }
  0x11   : > { %p3496_p11 = por %p174_p10, %p55_p3  ;;  %s203_s9 = sand.u32 1, %s3387_s20  }
  0x12   : > { %s2399_s10 = sshll.u32 %s203_s9, 9  ;;  %s2577_s11 = sshll.u32 %s3395_s22, 13 }
  0x13   : > { %s4046_s8 = scalar_select %p3496_p11, 1, 0 }
  0x14   : > { %s3507_s14 = scalar_lea.hbm %s4036_s0, %s2577_s11  ;;  %s207_s15 = scalar_lea.vmem [#allocation3], %s2399_s10 }
  0x15   : > { %s217_s16 = sshll.u32 %s207_s15, 4  ;;  %p3513_p0 = pnand %p3070_p13, %p3479_p4  ;;  %s3509_s16 = int_to_ptr.vmem [resolvable:$true] %s217_s16 }
  0x16   : > { %s3518_s24 = scalar_lea.sflag [#allocation4], %s203_s9  ;;  %s3287_s25 = scalar_lea.hbm %s3507_s14, 8192 }
  0x17   : > { %p3288_p2 = scmp.ne.s32.totalorder %s3507_s14, %s3287_s25  ;;  %p3289_p3 = pneg %p3513_p0 }
  0x18   : > { %s3292_s28 = scalar_lea.hbm %s4036_s0, 16384  ;;  %p3293_p4 = scmp.lt.u32.totalorder %s3507_s14, %s4036_s0 }
  0x19   : > { %p3290_p5 = pnand %p3289_p3, %p3288_p2  ;;  %p3294_p7 = scmp.lt.u32.totalorder %s3292_s28, %s3287_s25 }
  0x1a   : > { %p3296_p13 = scmp.lt.u32.totalorder %s3287_s25, %s3507_s14 }
  0x1b   : > { %p3291_p6 = pneg %p3290_p5  ;;  %p3295_p10 = por %p3294_p7, %p3293_p4 }
  0x1d   : > { %p3297_p12 = por %p3296_p13, %p3295_p10 }
  0x1f   : > { %p3298_p1 = pnand %p3297_p12, %p3291_p6 }
  0x21   : > { %3301 = shalt.err (!%p3298_p1)
}
  0x22   : > { %s3302_s9 = scalar_lea.vmem %s3509_s16, 8192  ;;  %s3401_s12 = smov [#allocation3]  }
  0x23   : > { %p3303_p2 = scmp.ne.s32.totalorder %s3509_s16, %s3302_s9  ;;  %s3307_s13 = sshll.u32 %s3401_s12, 4  ;;  %s3308_s13 = int_to_ptr.vmem [resolvable:$false] %s3307_s13 }
  0x24   : > { %s3309_s15 = scalar_lea.vmem %s3308_s13, 16384  ;;  %p3310_p9 = scmp.lt.s32.totalorder %s3509_s16, %s3308_s13 }
  0x25   : > { %p3305_p5 = pnand %p3303_p2, %p3289_p3  ;;  %p3311_p4 = scmp.lt.s32.totalorder %s3309_s15, %s3302_s9 }
  0x27   : > { %p3306_p11 = pneg %p3305_p5  ;;  %p3312_p7 = por %p3311_p4, %p3310_p9 }
  0x29   : > { %p3313_p10 = pnand %p3312_p7, %p3306_p11 }
  0x2b   : > { %3316 = shalt.err (!%p3313_p10)
}
  0x2c   : > { %s3402_s25 = smov 256   ;;  %s3403_s27 = smov 16  }
  0x2d   : > { %3065 = dma.hbm_to_vmem [thread:$0]  (!%p3513_p0), %s3507_s14, 8192, %s3509_s16, %s3518_s24, %s3402_s25, %s3402_s25, %s3403_s27  }
  0x2e   : > { %p234_p12 = scmp.lt.s32.totalorder %s3399_s23, 3  ;;  %p4048_p1 = scmp.ge.s32.totalorder %s3399_s23, 1 }
  0x30   : > { %p235_p3 = pnand %p4048_p1, %p234_p12 }
  0x31   : > { %s3550_s29 = sand.u32 (!%p235_p3), 1, %s3383_s19  }
  0x32   : > { %238 = sbr.rel (%p235_p3) target bundleno = 737 (0x2e1), region = 40  ;;  %s2404_s28 = sshll.u32 (!%p235_p3), %s3550_s29, 9 }
  0x33   : > { %s241_s10 = scalar_lea.sflag (!%p235_p3), [#allocation4], %s3550_s29  ;;  %s3554_s11 = scalar_lea.vmem (!%p235_p3), [#allocation3], %s2404_s28 }
  0x39   : > { %3370 = dma.done.wait (%p3485_p8), %s241_s10, 8192  }
  0x3a   : > { %3372 = vsyncadd (%p3485_p8), %s241_s10, 4294959104  ;;  %v3404_v0 = vmov 0   ;;  %v3127_v1 = vld [vmem:[%s4037_s1 + $0x40] sm:$0xff]   ;;  %v3129_v3 = vld [vmem:[%s4037_s1 + $0x48] sm:$0xff]   ;;  %s2406_s24 = sshll.u32 %s3391_s21, 5  ;;  %s2504_s15 = sshll.u32 %s3391_s21, 8 }
  0x3b   : > { %3125 = vset.pattern.permute.xlu0 %v3404_v0  ;;  %3126 = vset.pattern.permute.xlu1 %v3404_v0  ;;  %v3128_v2 = vld [vmem:[%s4037_s1] sm:$0xff]   ;;  %v3130_v4 = vld [vmem:[%s4037_s1 + $0x8] sm:$0xff]   ;;  %v3131_v5 = vld [vmem:[%s4037_s1 + $0x50] sm:$0xff]   ;;  %p279_p8 = scmp.lt.s32.totalorder %s2406_s24, 63  ;;  %s2405_s12 = sshll.u32 %s3550_s29, 7 }
  0x3c   : > { %3042 = vmatprep.subr.bf16.mxu1 %v3127_v1  ;;  %2706 = vmatprep.subr.bf16.mxu0 %v3127_v1  ;;  %v3132_v6 = vld [vmem:[%s4037_s1 + $0x10] sm:$0xff]   ;;  %v3133_v7 = vld [vmem:[%s4037_s1 + $0x58] sm:$0xff]   ;;  %v3135_v9 = vld [vmem:[%s4037_s1 + $0x60] sm:$0xff]   ;;  %s3932_s30 = scalar_lea.vmem [#allocation6], %s2405_s12  ;;  %s2282_s28 = scalar_lea.sflag [#allocation5], %s3550_s29 }
  0x3d   : > { %3050 = vmatpush3.bf16.msra.mxu1 %v3128_v2  ;;  %2707 = vmatpush3.bf16.msra.mxu0 %v3128_v2  ;;  %v3134_v8 = vld [vmem:[%s4037_s1 + $0x18] sm:$0xff]   ;;  %v3136_v10 = vld [vmem:[%s4037_s1 + $0x20] sm:$0xff]   ;;  %v3137_v11 = vld [vmem:[%s4037_s1 + $0x68] sm:$0xff]   ;;  %s4060_s24 = smov (!%p279_p8, %s2406_s24), 63  ;;  %s2295_s25 = sshll.u32 %s3932_s30, 4  ;;  %s3986_s25 = int_to_ptr.vmem [resolvable:$true] %s2295_s25 }
  0x3e   : > { %3043 = vmatprep.subr.bf16.mxu1 %v3129_v3  ;;  %2708 = vmatprep.subr.bf16.mxu0 %v3129_v3  ;;  %v3145_v12 = vld [vmem:[%s3554_s11 + $0x104] ss:$16 sps:$4 sm:$0xff]   ;;  %v3138_v13 = vld [vmem:[%s4037_s1 + $0x28] sm:$0xff]   ;;  %v3141_v16 = vld [vmem:[%s4037_s1 + $0x78] sm:$0xff]   ;;  %s2407_s16 = sshll.u32 %s4060_s24, 3  ;;  %s1389_s24 = sshra.s32 %s2504_s15, 3 }
  0x3f   : > { %1095 = vmatprep.mubr.bf16.mxu1 %v3145_v12  ;;  %v3139_v14 = vld [vmem:[%s4037_s1 + $0x70] sm:$0xff]   ;;  %v3142_v17 = vld [vmem:[%s4037_s1 + $0x38] sm:$0xff]   ;;  %v3146_v18 = vld [vmem:[%s4037_s1 + $0xc0] sm:$0xff]   ;;  %s3656_s13 = scalar_lea.vmem %s4038_s2, %s2407_s16  ;;  %s2505_s10 = sshll.u32 %s1389_s24, 2 }
  0x40   : > { %v3140_v15 = vld [vmem:[%s4037_s1 + $0x30] sm:$0xff]   ;;  %v3147_v20 = vld [vmem:[%s4037_s1 + $0x80] sm:$0xff]   ;;  %v3151_v22 = vld [vmem:[%s4037_s1 + $0xc8] sm:$0xff]   ;;  %s3805_s17 = scalar_lea.vmem %s4037_s1, %s2505_s10  ;;  %s2610_s15 = sshll.u32 %s3391_s21, 11 }
  0x41   : > { %3051 = vmatpush3.bf16.msra.mxu1 %v3130_v4  ;;  %2709 = vmatpush3.bf16.msra.mxu0 %v3130_v4  ;;  %v3143_v19 = vld [vmem:[%s3554_s11 + $0x100] ss:$16 sps:$4 sm:$0xff]   ;;  %v3148_v21 = vld [vmem:[%s3554_s11 + $0x124] ss:$16 sps:$4 sm:$0xff]   ;;  %v3152_v23 = vld [vmem:[%s4037_s1 + $0x88] sm:$0xff]   ;;  %s3984_s27 = scalar_lea.hbm %s4041_s5, %s2610_s15  ;;  %s3317_s10 = scalar_lea.vmem %s3986_s25, 2048 }
  0x42   : > { %3044 = vmatprep.subr.bf16.mxu1 %v3131_v5  ;;  %2710 = vmatprep.subr.bf16.mxu0 %v3131_v5  ;;  %v3156_v24 = vld [vmem:[%s4037_s1 + $0xd0] sm:$0xff]   ;;  %v3161_v28 = vld [vmem:[%s4037_s1 + $0xd8] sm:$0xff]   ;;  %v3166_v32 = vld [vmem:[%s4037_s1 + $0xe0] sm:$0xff]   ;;  %p3318_p9 = scmp.ne.s32.totalorder %s3986_s25, %s3317_s10  ;;  %p4049_p11 = scmp.ne.s32.totalorder %s4045_s6, 0 }
  0x43   : > { %v3150_v25 = vld [vmem:[%s3554_s11 + $0x120] ss:$16 sps:$4 sm:$0xff]   ;;  %v3153_v26 = vld [vmem:[%s3554_s11 + $0x144] ss:$16 sps:$4 sm:$0xff]   ;;  %v3162_v29 = vld [vmem:[%s4037_s1 + $0x98] sm:$0xff]   ;;  %s3405_s21 = smov [#allocation6]  }
  0x44   : > { %v3157_v27 = vld [vmem:[%s4037_s1 + $0x90] sm:$0xff]   ;;  %v3167_v36 = vld [vmem:[%s4037_s1 + $0xa0] sm:$0xff]   ;;  %v3171_v37 = vld [vmem:[%s4037_s1 + $0xe8] sm:$0xff]   ;;  %p3319_p0 = pnand %p3318_p9, %p4049_p11  ;;  %s3321_s14 = sshll.u32 %s3405_s21, 4  ;;  %s3322_s14 = int_to_ptr.vmem [resolvable:$false] %s3321_s14 }
  0x45   : > { %3052 = vmatpush3.bf16.msra.mxu1 %v3132_v6  ;;  %2711 = vmatpush3.bf16.msra.mxu0 %v3132_v6  ;;  %v3183_v30 = vld [vmem:[%s3554_s11] ss:$16 sps:$4 sm:$0xff]   ;;  %v3185_v31 = vld [vmem:[%s3554_s11 + $0x4] ss:$16 sps:$4 sm:$0xff]   ;;  %v3172_v39 = vld [vmem:[%s4037_s1 + $0xa8] sm:$0xff]   ;;  %s3323_s16 = scalar_lea.vmem %s3322_s14, 4096  ;;  %p3324_p13 = scmp.lt.s32.totalorder %s3986_s25, %s3322_s14 }
  0x46   : > { %3045 = vmatprep.subr.bf16.mxu1 %v3133_v7  ;;  %2712 = vmatprep.subr.bf16.mxu0 %v3133_v7  ;;  %v3155_v33 = vld [vmem:[%s3554_s11 + $0x140] ss:$16 sps:$4 sm:$0xff]   ;;  %v3189_v34 = vld [vmem:[%s3554_s11 + $0x24] ss:$16 sps:$4 sm:$0xff]   ;;  %v3181_v46 = vld [vmem:[%s4037_s1 + $0xf8] sm:$0xff]   ;;  %p3320_p6 = pneg %p3319_p0  ;;  %p3325_p2 = scmp.lt.s32.totalorder %s3323_s16, %s3317_s10 }
  0x47   : > { %1031 = vmatprep.mubr.bf16.mxu0 %v3185_v31  ;;  %v3158_v35 = vld [vmem:[%s3554_s11 + $0x164] ss:$16 sps:$4 sm:$0xff]   ;;  %v3191_v38 = vld [vmem:[%s3554_s11 + $0x20] ss:$16 sps:$4 sm:$0xff]   ;;  %v1458_v47 = vld [vmem:[%s3656_s13 + $0x8] sm:$0xff] }
  0x48   : > { %v3195_v40 = vld [vmem:[%s3554_s11 + $0x44] ss:$16 sps:$4 sm:$0xff]   ;;  %v3160_v43 = vld [vmem:[%s3554_s11 + $0x160] ss:$16 sps:$4 sm:$0xff]   ;;  %v3182_v49 = vld [vmem:[%s4037_s1 + $0xb8] sm:$0xff]   ;;  %p3326_p5 = por %p3325_p2, %p3324_p13 }
  0x49   : > { %3053 = vmatpush3.bf16.msra.mxu1 %v3134_v8  ;;  %2713 = vmatpush3.bf16.msra.mxu0 %v3134_v8  ;;  %v3176_v41 = vld [vmem:[%s4037_s1 + $0xf0] sm:$0xff]   ;;  %v1457_v42 = vld [vmem:[%s3656_s13] sm:$0xff]  ;;  %v1460_v53 = vld [vmem:[%s3656_s13 + $0x18] sm:$0xff] }
  0x4a   : > { %3046 = vmatprep.subr.bf16.mxu1 %v3135_v9  ;;  %2714 = vmatprep.subr.bf16.mxu0 %v3135_v9  ;;  %v3163_v44 = vld [vmem:[%s3554_s11 + $0x184] ss:$16 sps:$4 sm:$0xff]   ;;  %v3197_v50 = vld [vmem:[%s3554_s11 + $0x40] ss:$16 sps:$4 sm:$0xff]   ;;  %v1462_v55 = vld [vmem:[%s3656_s13 + $0x28] sm:$0xff]  ;;  %p3327_p4 = pnand %p3326_p5, %p3320_p6 }
  0x4b   : > { %1491 = vperm.xlu0 %3125, %v1457_v42   ;;  %v3177_v45 = vld [vmem:[%s4037_s1 + $0xb0] sm:$0xff]   ;;  %v1461_v52 = vld [vmem:[%s3656_s13 + $0x20] sm:$0xff]  ;;  %v1464_v59 = vld [vmem:[%s3656_s13 + $0x38] sm:$0xff] }
  0x4c   : > { %v1459_v48 = vld [vmem:[%s3656_s13 + $0x10] sm:$0xff]  ;;  %v1465_v61 = vld [vmem:[%s3656_s13 + $0x40] sm:$0xff]  ;;  %v1466_v63 = vld [vmem:[%s3656_s13 + $0x48] sm:$0xff] }
  0x4d   : > { %3054 = vmatpush3.bf16.msra.mxu1 %v3136_v10  ;;  %2715 = vmatpush3.bf16.msra.mxu0 %v3136_v10  ;;  %v3201_v51 = vld [vmem:[%s3554_s11 + $0x64] ss:$16 sps:$4 sm:$0xff]   ;;  %v3165_v54 = vld [vmem:[%s3554_s11 + $0x180] ss:$16 sps:$4 sm:$0xff]   ;;  %v1468_v3 = vld [vmem:[%s3656_s13 + $0x58] sm:$0xff] }
  0x4e   : > { %3047 = vmatprep.subr.bf16.mxu1 %v3137_v11  ;;  %2716 = vmatprep.subr.bf16.mxu0 %v3137_v11  ;;  %v3168_v56 = vld [vmem:[%s3554_s11 + $0x1a4] ss:$16 sps:$4 sm:$0xff]   ;;  %v3203_v58 = vld [vmem:[%s3554_s11 + $0x60] ss:$16 sps:$4 sm:$0xff]   ;;  %v1470_v7 = vld [vmem:[%s3656_s13 + $0x68] sm:$0xff] }
  0x4f   : > { %1501 = vperm.xlu1 %3126, %v1459_v48   ;;  %1496 = vperm.xlu0 %3125, %v1458_v47   ;;  %v1463_v57 = vld [vmem:[%s3656_s13 + $0x30] sm:$0xff]  ;;  %v1469_v5 = vld [vmem:[%s3656_s13 + $0x60] sm:$0xff]  ;;  %v1472_v11 = vld [vmem:[%s3656_s13 + $0x78] sm:$0xff] }
  0x50   : > { %v3207_v60 = vld [vmem:[%s3554_s11 + $0x84] ss:$16 sps:$4 sm:$0xff]   ;;  %v3170_v62 = vld [vmem:[%s3554_s11 + $0x1a0] ss:$16 sps:$4 sm:$0xff]   ;;  %v3198_v31 = vld [vmem:[%s3554_s11 + $0x4c] ss:$16 sps:$4 sm:$0xff]  }
  0x51   : > { %3055 = vmatpush3.bf16.msra.mxu1 %v3138_v13  ;;  %2717 = vmatpush3.bf16.msra.mxu0 %v3138_v13  ;;  %v3173_v0 = vld [vmem:[%s3554_s11 + $0x1c4] ss:$16 sps:$4 sm:$0xff]   ;;  %v3209_v2 = vld [vmem:[%s3554_s11 + $0x80] ss:$16 sps:$4 sm:$0xff]   ;;  %v3212_v42 = vld [vmem:[%s3554_s11 + $0x88] ss:$16 sps:$4 sm:$0xff]  }
  0x52   : > { %3048 = vmatprep.subr.bf16.mxu1 %v3139_v14  ;;  %2718 = vmatprep.subr.bf16.mxu0 %v3139_v14  ;;  %v1467_v1 = vld [vmem:[%s3656_s13 + $0x50] sm:$0xff]  ;;  %v1473_v13 = vld [vmem:[%s3656_s13 + $0x80] sm:$0xff]  ;;  %v3222_v47 = vld [vmem:[%s3554_s11 + $0xcc] ss:$16 sps:$4 sm:$0xff]  }
  0x53   : > { %1506 = vperm.xlu1 %3126, %v1460_v53   ;;  %1511 = vperm.xlu0 %3125, %v1461_v52   ;;  %v3213_v4 = vld [vmem:[%s3554_s11 + $0xa4] ss:$16 sps:$4 sm:$0xff]   ;;  %v3175_v6 = vld [vmem:[%s3554_s11 + $0x1c0] ss:$16 sps:$4 sm:$0xff]   ;;  %v3257_v48 = vld [vmem:[%s4039_s3 + $0x48] sm:$0xff]  }
  0x54   : > { %v3178_v8 = vld [vmem:[%s3554_s11 + $0x1e4] ss:$16 sps:$4 sm:$0xff]   ;;  %v3215_v10 = vld [vmem:[%s3554_s11 + $0xa0] ss:$16 sps:$4 sm:$0xff]  }
  0x55   : > { %3056 = vmatpush3.bf16.msra.mxu1 %v3140_v15  ;;  %2719 = vmatpush3.bf16.msra.mxu0 %v3140_v15  ;;  %v1471_v9 = vld [vmem:[%s3656_s13 + $0x70] sm:$0xff]  ;;  %v3188_v15 = vld [vmem:[%s3554_s11 + $0xc] ss:$16 sps:$4 sm:$0xff]  }
  0x56   : > { %3049 = vmatprep.subr.bf16.mxu1 %v3141_v16  ;;  %2720 = vmatprep.subr.bf16.mxu0 %v3141_v16  ;;  %v3219_v12 = vld [vmem:[%s3554_s11 + $0xc4] ss:$16 sps:$4 sm:$0xff]   ;;  %v3180_v14 = vld [vmem:[%s3554_s11 + $0x1e0] ss:$16 sps:$4 sm:$0xff]  }
  0x57   : > { %1516 = vperm.xlu1 %3126, %v1462_v55   ;;  %1521 = vperm.xlu0 %3125, %v1463_v57   ;;  %v1475_v16 = vld [vmem:[%s3656_s13 + $0x90] sm:$0xff]  ;;  %v3231_v55 = vld [vmem:[%s3554_s11 + $0x10c] ss:$16 sps:$4 sm:$0xff]  }
  0x58   : > { %v3259_v52 = vld [vmem:[%s4039_s3 + $0x50] sm:$0xff]   ;;  %v3262_v57 = vld [vmem:[%s4039_s3 + $0x18] sm:$0xff]  }
  0x59   : > { %3057 = vmatpush3.bf16.msra.mxu1 %v3142_v17  ;;  %2721 = vmatpush3.bf16.msra.mxu0 %v3142_v17  ;;  %v1474_v17 = vld [vmem:[%s3656_s13 + $0x88] sm:$0xff]  ;;  %v3260_v53 = vld [vmem:[%s4039_s3 + $0x10] sm:$0xff]  }
  0x5a   : > { %2818 = vmatprep.subr.bf16.mxu1 %v3146_v18  ;;  %v3221_v18 = vld [vmem:[%s3554_s11 + $0xc0] ss:$16 sps:$4 sm:$0xff]  }
  0x5b   : > { %1526 = vperm.xlu1 %3126, %v1464_v59   ;;  %1531 = vperm.xlu0 %3125, %v1465_v61   ;;  %v3234_v59 = vld [vmem:[%s3554_s11 + $0x12c] ss:$16 sps:$4 sm:$0xff]   ;;  %v3264_v61 = vld [vmem:[%s4039_s3 + $0x20] sm:$0xff]  }
  0x5c   : > { %1096 = vmatmul.mubr.bf16.vlgmr.msra.gmra.mrb[0].mxu1 %v3143_v19  ;;  %1032 = vmatmul.mubr.bf16.vlgmr.msra.gmra.mrb[0].mxu0 %v3183_v30  ;;  %v1476_v19 = vld [vmem:[%s3656_s13 + $0x98] sm:$0xff]  ;;  %v1482_v30 = vld [vmem:[%s3656_s13 + $0xc8] sm:$0xff] }
  0x5d   : > { %2819 = vmatpush3.bf16.msra.mxu1 %v3147_v20  ;;  %1103 = vmatprep.mubr.bf16.mxu1 %v3148_v21  ;;  %v3225_v20 = vld [vmem:[%s3554_s11 + $0xe4] ss:$16 sps:$4 sm:$0xff]  }
  0x5e   : > { %2820 = vmatprep.subr.bf16.mxu1 %v3151_v22  ;;  %1039 = vmatprep.mubr.bf16.mxu0 %v3189_v34  ;;  %v1477_v21 = vld [vmem:[%s3656_s13 + $0xa0] sm:$0xff]  ;;  %v3186_v22 = vld [vmem:[%s3554_s11 + $0x8] ss:$16 sps:$4 sm:$0xff]  }
  0x5f   : > { %1536 = vperm.xlu1 %3126, %v1466_v63   ;;  %1541 = vperm.xlu0 %3125, %v1467_v1   ;;  %v1485_v34 = vld [vmem:[%s3656_s13 + $0xe0] sm:$0xff]  ;;  %v3237_v63 = vld [vmem:[%s3554_s11 + $0x14c] ss:$16 sps:$4 sm:$0xff]  }
  0x60   : > { %v3266_v1 = vld [vmem:[%s4039_s3 + $0x28] sm:$0xff]  }
  0x61   : > { %2821 = vmatpush3.bf16.msra.mxu1 %v3152_v23  ;;  %v1478_v23 = vld [vmem:[%s3656_s13 + $0xa8] sm:$0xff] }
  0x62   : > { %2822 = vmatprep.subr.bf16.mxu1 %v3156_v24  ;;  %v3192_v24 = vld [vmem:[%s3554_s11 + $0x2c] ss:$16 sps:$4 sm:$0xff]  }
  0x63   : > { %1546 = vperm.xlu1 %3126, %v1468_v3   ;;  %1551 = vperm.xlu0 %3125, %v1469_v5   ;;  %v3240_v3 = vld [vmem:[%s3554_s11 + $0x16c] ss:$16 sps:$4 sm:$0xff]   ;;  %v3268_v5 = vld [vmem:[%s4039_s3 + $0x30] sm:$0xff]  }
  0x64   : > { %1104 = vmatmul.mubr.bf16.gmra.mrb[4].mxu1 %v3150_v25  ;;  %1040 = vmatmul.mubr.bf16.gmra.mrb[4].mxu0 %v3191_v38  ;;  %v1479_v25 = vld [vmem:[%s3656_s13 + $0xb0] sm:$0xff] }
  0x65   : > { %1111 = vmatprep.mubr.bf16.mxu1 %v3153_v26  ;;  %2823 = vmatpush3.bf16.msra.mxu1 %v3157_v27  ;;  %v3227_v26 = vld [vmem:[%s3554_s11 + $0xe0] ss:$16 sps:$4 sm:$0xff]   ;;  %v1480_v27 = vld [vmem:[%s3656_s13 + $0xb8] sm:$0xff] }
  0x66   : > { %2824 = vmatprep.subr.bf16.mxu1 %v3161_v28  ;;  %1047 = vmatprep.mubr.bf16.mxu0 %v3195_v40  ;;  %v1481_v28 = vld [vmem:[%s3656_s13 + $0xc0] sm:$0xff]  ;;  %v1487_v38 = vld [vmem:[%s3656_s13 + $0xf0] sm:$0xff]  ;;  %v3206_v40 = vld [vmem:[%s3554_s11 + $0x68] ss:$16 sps:$4 sm:$0xff]  }
  0x67   : > { %1556 = vperm.xlu1 %3126, %v1470_v7   ;;  %1561 = vperm.xlu0 %3125, %v1471_v9   ;;  %v3243_v7 = vld [vmem:[%s3554_s11 + $0x18c] ss:$16 sps:$4 sm:$0xff]  }
  0x68   : > { %v3270_v9 = vld [vmem:[%s4039_s3 + $0x38] sm:$0xff]  }
  0x69   : > { %2825 = vmatpush3.bf16.msra.mxu1 %v3162_v29  ;;  %v3194_v29 = vld [vmem:[%s3554_s11 + $0x28] ss:$16 sps:$4 sm:$0xff]  }
  0x6a   : > { %2826 = vmatprep.subr.bf16.mxu1 %v3166_v32  ;;  %v1483_v32 = vld [vmem:[%s3656_s13 + $0xd0] sm:$0xff] }
  0x6b   : > { %1566 = vperm.xlu1 %3126, %v1472_v11   ;;  %1571 = vperm.xlu0 %3125, %v1473_v13   ;;  %v3246_v11 = vld [vmem:[%s3554_s11 + $0x1ac] ss:$16 sps:$4 sm:$0xff]   ;;  %v3248_v13 = vld [vmem:[%s3554_s11 + $0x1a8] ss:$16 sps:$4 sm:$0xff]  }
  0x6c   : > { %1112 = vmatmul.mubr.bf16.gmra.mrb[8].mxu1 %v3155_v33  ;;  %1048 = vmatmul.mubr.bf16.gmra.mrb[8].mxu0 %v3197_v50  ;;  %v1484_v33 = vld [vmem:[%s3656_s13 + $0xd8] sm:$0xff] }
  0x6d   : > { %1119 = vmatprep.mubr.bf16.mxu1 %v3158_v35  ;;  %2827 = vmatpush3.bf16.msra.mxu1 %v3167_v36  ;;  %v3200_v35 = vld [vmem:[%s3554_s11 + $0x48] ss:$16 sps:$4 sm:$0xff]  }
  0x6e   : > { %2828 = vmatprep.subr.bf16.mxu1 %v3171_v37  ;;  %1055 = vmatprep.mubr.bf16.mxu0 %v3201_v51  ;;  %v1486_v36 = vld [vmem:[%s3656_s13 + $0xe8] sm:$0xff] }
  0x6f   : > { %1576 = vperm.xlu1 %3126, %v1474_v17   ;;  %1581 = vperm.xlu0 %3125, %v1475_v16   ;;  %v3204_v37 = vld [vmem:[%s3554_s11 + $0x6c] ss:$16 sps:$4 sm:$0xff]   ;;  %v3224_v50 = vld [vmem:[%s3554_s11 + $0xc8] ss:$16 sps:$4 sm:$0xff]  }
  0x70   : > { %v3228_v51 = vld [vmem:[%s3554_s11 + $0xec] ss:$16 sps:$4 sm:$0xff]   ;;  %v3254_v17 = vld [vmem:[%s3554_s11 + $0x1e8] ss:$16 sps:$4 sm:$0xff]  }
  0x71   : > { %2829 = vmatpush3.bf16.msra.mxu1 %v3172_v39  ;;  %v1488_v39 = vld [vmem:[%s3656_s13 + $0xf8] sm:$0xff] }
  0x72   : > { %2830 = vmatprep.subr.bf16.mxu1 %v3176_v41  ;;  %v3210_v41 = vld [vmem:[%s3554_s11 + $0x8c] ss:$16 sps:$4 sm:$0xff]  }
  0x73   : > { %1586 = vperm.xlu1 %3126, %v1476_v19   ;;  %1591 = vperm.xlu0 %3125, %v1477_v21   ;;  %v3252_v16 = vld [vmem:[%s3554_s11 + $0x1ec] ss:$16 sps:$4 sm:$0xff]  }
  0x74   : > { %1120 = vmatmul.mubr.bf16.gmra.mrb[12].mxu1 %v3160_v43  ;;  %1056 = vmatmul.mubr.bf16.gmra.mrb[12].mxu0 %v3203_v58  ;;  %v3216_v43 = vld [vmem:[%s3554_s11 + $0xac] ss:$16 sps:$4 sm:$0xff]   ;;  %v3233_v58 = vld [vmem:[%s3554_s11 + $0x108] ss:$16 sps:$4 sm:$0xff]  }
  0x75   : > { %1127 = vmatprep.mubr.bf16.mxu1 %v3163_v44  ;;  %2831 = vmatpush3.bf16.msra.mxu1 %v3177_v45  ;;  %v3255_v44 = vld [vmem:[%s4039_s3 + $0x40] sm:$0xff]  }
  0x76   : > { %2832 = vmatprep.subr.bf16.mxu1 %v3181_v46  ;;  %1063 = vmatprep.mubr.bf16.mxu0 %v3207_v60  ;;  %v3256_v45 = vld [vmem:[%s4039_s3] sm:$0xff]   ;;  %v3218_v46 = vld [vmem:[%s3554_s11 + $0xa8] ss:$16 sps:$4 sm:$0xff]  }
  0x77   : > { %1596 = vperm.xlu1 %3126, %v1478_v23   ;;  %1601 = vperm.xlu0 %3125, %v1479_v25   ;;  %v3263_v60 = vld [vmem:[%s4039_s3 + $0x60] sm:$0xff]  }
  0x78   : > { %2930 = vmatprep.subr.bf16.mxu0 %v3255_v44 }
  0x79   : > { %2833 = vmatpush3.bf16.msra.mxu1 %v3182_v49  ;;  %2931 = vmatpush3.bf16.msra.mxu0 %v3256_v45  ;;  %v3258_v49 = vld [vmem:[%s4039_s3 + $0x8] sm:$0xff]  }
  0x7a   : > { %2932 = vmatprep.subr.bf16.mxu0 %v3257_v48 }
  0x7b   : > { %1606 = vperm.xlu1 %3126, %v1480_v27   ;;  %1611 = vperm.xlu0 %3125, %v1481_v28  }
  0x7c   : > { %1128 = vmatmul.mubr.bf16.gmra.mrb[16].mxu1 %v3165_v54  ;;  %1064 = vmatmul.mubr.bf16.gmra.mrb[16].mxu0 %v3209_v2  ;;  %v3230_v54 = vld [vmem:[%s3554_s11 + $0xe8] ss:$16 sps:$4 sm:$0xff]  }
  0x7d   : > { %1135 = vmatprep.mubr.bf16.mxu1 %v3168_v56  ;;  %1071 = vmatprep.mubr.bf16.mxu0 %v3213_v4  ;;  %v3261_v56 = vld [vmem:[%s4039_s3 + $0x58] sm:$0xff]   ;;  %v3267_v4 = vld [vmem:[%s4039_s3 + $0x70] sm:$0xff]  }
  0x7e   : > { %2933 = vmatpush3.bf16.msra.mxu0 %v3258_v49  ;;  %v3239_v2 = vld [vmem:[%s3554_s11 + $0x148] ss:$16 sps:$4 sm:$0xff]  }
  0x7f   : > { %1616 = vperm.xlu1 %3126, %v1482_v30   ;;  %1621 = vperm.xlu0 %3125, %v1483_v32  }
  0x80   : > { %2934 = vmatprep.subr.bf16.mxu0 %v3259_v52 }
  0x82   : > { %2935 = vmatpush3.bf16.msra.mxu0 %v3260_v53 }
  0x83   : > { %1626 = vperm.xlu1 %3126, %v1484_v33   ;;  %1631 = vperm.xlu0 %3125, %v1485_v34  }
  0x84   : > { %1136 = vmatmul.mubr.bf16.gmra.mrb[20].mxu1 %v3170_v62  ;;  %1072 = vmatmul.mubr.bf16.gmra.mrb[20].mxu0 %v3215_v10  ;;  %v3236_v62 = vld [vmem:[%s3554_s11 + $0x128] ss:$16 sps:$4 sm:$0xff]  }
  0x85   : > { %1143 = vmatprep.mubr.bf16.mxu1 %v3173_v0  ;;  %1079 = vmatprep.mubr.bf16.mxu0 %v3219_v12  ;;  %v3265_v0 = vld [vmem:[%s4039_s3 + $0x68] sm:$0xff]   ;;  %v3271_v12 = vld [vmem:[%s3805_s17] sm:$0xff]  }
  0x86   : > { %2936 = vmatprep.subr.bf16.mxu0 %v3261_v56  ;;  %v3245_v10 = vld [vmem:[%s3554_s11 + $0x188] ss:$16 sps:$4 sm:$0xff]  }
  0x87   : > { %1636 = vperm.xlu1 %3126, %v1486_v36   ;;  %1641 = vperm.xlu0 %3125, %v1487_v38  }
  0x88   : > { %2937 = vmatpush3.bf16.msra.mxu0 %v3262_v57 }
  0x89   : > { %2938 = vmatprep.subr.bf16.mxu0 %v3263_v60 }
  0x8b   : > { %1646 = vperm.xlu1 %3126, %v1488_v39  }
  0x8c   : > { %1144 = vmatmul.mubr.bf16.gmra.mrb[24].mxu1 %v3175_v6  ;;  %1080 = vmatmul.mubr.bf16.gmra.mrb[24].mxu0 %v3221_v18  ;;  %v3242_v6 = vld [vmem:[%s3554_s11 + $0x168] ss:$16 sps:$4 sm:$0xff]  }
  0x8d   : > { %1151 = vmatprep.mubr.bf16.mxu1 %v3178_v8  ;;  %1087 = vmatprep.mubr.bf16.mxu0 %v3225_v20  ;;  %v3269_v8 = vld [vmem:[%s4039_s3 + $0x78] sm:$0xff]  }
  0x8e   : > { %2939 = vmatpush3.bf16.msra.mxu0 %v3264_v61 }
  0x8f   : > { %2940 = vmatprep.subr.bf16.mxu0 %v3265_v0 }
  0x92   : > { %2941 = vmatpush3.bf16.msra.mxu0 %v3266_v1 }
  0x93   : > { %2942 = vmatprep.subr.bf16.mxu0 %v3267_v4 }
  0x94   : > { %1152 = vmatmul.mubr.bf16.gmra.mrb[28].mxu1 %v3180_v14  ;;  %1088 = vmatmul.mubr.bf16.gmra.mrb[28].mxu0 %v3227_v26  ;;  %v3249_v14 = vld [vmem:[%s3554_s11 + $0x1cc] ss:$16 sps:$4 sm:$0xff]  }
  0x95   : > { %1192 = vmatprep.mubr.bf16.mxu1 %v3188_v15  ;;  %1960 = vmatprep.mubr.bf16.mxu0 %v3271_v12  ;;  %v3251_v15 = vld [vmem:[%s3554_s11 + $0x1c8] ss:$16 sps:$4 sm:$0xff]  }
  0x96   : > { %2943 = vmatpush3.bf16.msra.mxu0 %v3268_v5 }
  0x97   : > { %2944 = vmatprep.subr.bf16.mxu0 %v3269_v8 }
  0x9a   : > { %2945 = vmatpush3.bf16.msra.mxu0 %v3270_v9 }
  0x9c   : > { %1193 = vmatmul.mubr.bf16.vlgmr.msra.gmra.mrb[32].mxu1 %v3186_v22 }
  0x9d   : > { %1200 = vmatprep.mubr.bf16.mxu1 %v3192_v24 }
  0xa4   : > { %1201 = vmatmul.mubr.bf16.gmra.mrb[36].mxu1 %v3194_v29 }
  0xa5   : > { %1208 = vmatprep.mubr.bf16.mxu1 %v3198_v31 }
  0xac   : > { %1209 = vmatmul.mubr.bf16.gmra.mrb[40].mxu1 %v3200_v35 }
  0xad   : > { %1216 = vmatprep.mubr.bf16.mxu1 %v3204_v37 }
  0xb4   : > { %1217 = vmatmul.mubr.bf16.gmra.mrb[44].mxu1 %v3206_v40 }
  0xb5   : > { %1224 = vmatprep.mubr.bf16.mxu1 %v3210_v41 }
  0xbc   : > { %1225 = vmatmul.mubr.bf16.gmra.mrb[48].mxu1 %v3212_v42 }
  0xbd   : > { %1232 = vmatprep.mubr.bf16.mxu1 %v3216_v43 }
  0xc4   : > { %1233 = vmatmul.mubr.bf16.gmra.mrb[52].mxu1 %v3218_v46 }
  0xc5   : > { %1240 = vmatprep.mubr.bf16.mxu1 %v3222_v47 }
  0xcc   : > { %1241 = vmatmul.mubr.bf16.gmra.mrb[56].mxu1 %v3224_v50 }
  0xcd   : > { %1248 = vmatprep.mubr.bf16.mxu1 %v3228_v51 }
  0xd4   : > { %1249 = vmatmul.mubr.bf16.gmra.mrb[60].mxu1 %v3230_v54 }
  0xd5   : > { %1256 = vmatprep.mubr.bf16.mxu1 %v3231_v55 }
  0xdc   : > { %1257 = vmatmul.mubr.bf16.gmra.mrb[64].mxu1 %v3233_v58 }
  0xdd   : > { %1264 = vmatprep.mubr.bf16.mxu1 %v3234_v59 }
  0xe4   : > { %1265 = vmatmul.mubr.bf16.gmra.mrb[68].mxu1 %v3236_v62 }
  0xe5   : > { %1272 = vmatprep.mubr.bf16.mxu1 %v3237_v63 }
  0xec   : > { %1273 = vmatmul.mubr.bf16.gmra.mrb[72].mxu1 %v3239_v2 }
  0xed   : > { %1280 = vmatprep.mubr.bf16.mxu1 %v3240_v3 }
  0xf4   : > { %1281 = vmatmul.mubr.bf16.gmra.mrb[76].mxu1 %v3242_v6 }
  0xf5   : > { %1288 = vmatprep.mubr.bf16.mxu1 %v3243_v7 }
  0xfc   : > { %1289 = vmatmul.mubr.bf16.gmra.mrb[80].mxu1 %v3245_v10 }
  0xfd   : > { %1296 = vmatprep.mubr.bf16.mxu1 %v3246_v11 }
 0x104   : > { %1297 = vmatmul.mubr.bf16.gmra.mrb[84].mxu1 %v3248_v13 }
 0x105   : > { %1304 = vmatprep.mubr.bf16.mxu1 %v3249_v14 }
 0x10c   : > { %1305 = vmatmul.mubr.bf16.gmra.mrb[88].mxu1 %v3251_v15 }
 0x10d   : > { %1312 = vmatprep.mubr.bf16.mxu1 %v3252_v16 }
 0x114   : > { %1313 = vmatmul.mubr.bf16.gmra.mrb[92].mxu1 %v3254_v17 }
 0x12f   : > { %v2770_v18 = vpop.f32.mrb[0].mxu1  ;;  %v2722_v30 = vpop.f32.mrb[0].mxu0 }
 0x130   : > { %v2771_v19 = vpop.f32.mrb[1].mxu1  ;;  %v2723_v31 = vpop.f32.mrb[1].mxu0 }
 0x131   : > { %v3813_v20 = vadd.f32 %v2771_v19, %v2770_v18  ;;  %v2773_v21 = vpop.f32.mrb[2].mxu1  ;;  %v3821_v32 = vadd.f32 %v2723_v31, %v2722_v30  ;;  %v2725_v33 = vpop.f32.mrb[2].mxu0 }
 0x132   : > { %v2774_v22 = vpop.f32.mrb[3].mxu1  ;;  %v2726_v34 = vpop.f32.mrb[3].mxu0 }
 0x133   : > { %v3815_v23 = vadd.f32 %v2774_v22, %v2773_v21  ;;  %v3823_v36 = vadd.f32 %v2726_v34, %v2725_v33 }
 0x137   : > { %v2776_v24 = vpop.f32.mrb[4].mxu1  ;;  %v2728_v42 = vpop.f32.mrb[4].mxu0 }
 0x138   : > { %v2777_v25 = vpop.f32.mrb[5].mxu1  ;;  %v2729_v43 = vpop.f32.mrb[5].mxu0 }
 0x139   : > { %v3817_v26 = vadd.f32 %v2777_v25, %v2776_v24  ;;  %v2779_v27 = vpop.f32.mrb[6].mxu1  ;;  %v3829_v44 = vadd.f32 %v2729_v43, %v2728_v42  ;;  %v2731_v45 = vpop.f32.mrb[6].mxu0 }
 0x13a   : > { %v2780_v28 = vpop.f32.mrb[7].mxu1  ;;  %v2732_v46 = vpop.f32.mrb[7].mxu0 }
 0x13b   : > { %v3819_v29 = vadd.f32 %v2780_v28, %v2779_v27  ;;  %v3831_v48 = vadd.f32 %v2732_v46, %v2731_v45 }
 0x13f   : > { %v2782_v35 = vpop.f32.mrb[8].mxu1  ;;  %v2734_v54 = vpop.f32.mrb[8].mxu0 }
 0x140   : > { %v2783_v37 = vpop.f32.mrb[9].mxu1  ;;  %v2735_v55 = vpop.f32.mrb[9].mxu0 }
 0x141   : > { %v3825_v38 = vadd.f32 %v2783_v37, %v2782_v35  ;;  %v2785_v39 = vpop.f32.mrb[10].mxu1  ;;  %v3837_v56 = vadd.f32 %v2735_v55, %v2734_v54  ;;  %v2737_v57 = vpop.f32.mrb[10].mxu0 }
 0x142   : > { %v2786_v40 = vpop.f32.mrb[11].mxu1  ;;  %v2738_v58 = vpop.f32.mrb[11].mxu0 }
 0x143   : > { %v3827_v41 = vadd.f32 %v2786_v40, %v2785_v39  ;;  %v3839_v60 = vadd.f32 %v2738_v58, %v2737_v57  ;;  %v1492_v58 = vpop.permute.xlu0 %1491 }
 0x147   : > { %v2788_v47 = vpop.f32.mrb[12].mxu1  ;;  %v2740_v2 = vpop.f32.mrb[12].mxu0 }
 0x148   : > { %v2789_v49 = vpop.f32.mrb[13].mxu1  ;;  %v2741_v3 = vpop.f32.mrb[13].mxu0 }
 0x149   : > { %v3833_v50 = vadd.f32 %v2789_v49, %v2788_v47  ;;  %v2791_v51 = vpop.f32.mrb[14].mxu1  ;;  %v3845_v4 = vadd.f32 %v2741_v3, %v2740_v2  ;;  %v2743_v5 = vpop.f32.mrb[14].mxu0 }
 0x14a   : > { %v2792_v52 = vpop.f32.mrb[15].mxu1  ;;  %v2744_v6 = vpop.f32.mrb[15].mxu0 }
 0x14b   : > { %v3835_v53 = vadd.f32 %v2792_v52, %v2791_v51  ;;  %v3847_v8 = vadd.f32 %v2744_v6, %v2743_v5 }
 0x14f   : > { %v2794_v59 = vpop.f32.mrb[16].mxu1  ;;  %v2746_v14 = vpop.f32.mrb[16].mxu0 }
 0x150   : > { %v2795_v61 = vpop.f32.mrb[17].mxu1  ;;  %v2747_v15 = vpop.f32.mrb[17].mxu0 }
 0x151   : > { %v3841_v62 = vadd.f32 %v2795_v61, %v2794_v59  ;;  %v2797_v63 = vpop.f32.mrb[18].mxu1  ;;  %v3853_v16 = vadd.f32 %v2747_v15, %v2746_v14  ;;  %v2749_v17 = vpop.f32.mrb[18].mxu0 }
 0x152   : > { %v2798_v0 = vpop.f32.mrb[19].mxu1  ;;  %v2750_v18 = vpop.f32.mrb[19].mxu0 }
 0x153   : > { %v3843_v1 = vadd.f32 %v2798_v0, %v2797_v63  ;;  %v3855_v21 = vadd.f32 %v2750_v18, %v2749_v17 }
 0x157   : > { %v2800_v7 = vpop.f32.mrb[20].mxu1  ;;  %v2752_v30 = vpop.f32.mrb[20].mxu0 }
 0x158   : > { %v2801_v9 = vpop.f32.mrb[21].mxu1  ;;  %v2753_v31 = vpop.f32.mrb[21].mxu0 }
 0x159   : > { %v3849_v10 = vadd.f32 %v2801_v9, %v2800_v7  ;;  %v2803_v11 = vpop.f32.mrb[22].mxu1  ;;  %v3861_v33 = vadd.f32 %v2753_v31, %v2752_v30  ;;  %v2755_v34 = vpop.f32.mrb[22].mxu0 }
 0x15a   : > { %v2804_v12 = vpop.f32.mrb[23].mxu1  ;;  %v2756_v35 = vpop.f32.mrb[23].mxu0 }
 0x15b   : > { %v3851_v13 = vadd.f32 %v2804_v12, %v2803_v11  ;;  %v3863_v39 = vadd.f32 %v2756_v35, %v2755_v34  ;;  %v1497_v12 = vpop.permute.xlu0 %1496 }
 0x15f   : > { %v2806_v19 = vpop.f32.mrb[24].mxu1  ;;  %v2758_v47 = vpop.f32.mrb[24].mxu0 }
 0x160   : > { %v2807_v22 = vpop.f32.mrb[25].mxu1  ;;  %v2759_v49 = vpop.f32.mrb[25].mxu0 }
 0x161   : > { %v3857_v24 = vadd.f32 %v2807_v22, %v2806_v19  ;;  %v2809_v25 = vpop.f32.mrb[26].mxu1  ;;  %v3869_v51 = vadd.f32 %v2759_v49, %v2758_v47  ;;  %v2761_v52 = vpop.f32.mrb[26].mxu0 }
 0x162   : > { %v2810_v27 = vpop.f32.mrb[27].mxu1  ;;  %v2762_v54 = vpop.f32.mrb[27].mxu0 }
 0x163   : > { %v3859_v28 = vadd.f32 %v2810_v27, %v2809_v25  ;;  %v3871_v57 = vadd.f32 %v2762_v54, %v2761_v52  ;;  %v1502_v22 = vpop.permute.xlu1 %1501  ;;  %v3272_v27 = vld [vmem:[%s3805_s17 + $0x8] sm:$0xff]   ;;  %v3273_v52 = vld [vmem:[%s3805_s17 + $0x10] sm:$0xff]  }
 0x167   : > { %v2812_v37 = vpop.f32.mrb[28].mxu1  ;;  %v2764_v5 = vpop.f32.mrb[28].mxu0 }
 0x168   : > { %v2813_v40 = vpop.f32.mrb[29].mxu1  ;;  %v2765_v6 = vpop.f32.mrb[29].mxu0 }
 0x169   : > { %v3865_v42 = vadd.f32 %v2813_v40, %v2812_v37  ;;  %v2815_v43 = vpop.f32.mrb[30].mxu1  ;;  %v3875_v9 = vadd.f32 %v2765_v6, %v2764_v5  ;;  %v2767_v11 = vpop.f32.mrb[30].mxu0 }
 0x16a   : > { %v2816_v45 = vpop.f32.mrb[31].mxu1  ;;  %v2768_v14 = vpop.f32.mrb[31].mxu0 }
 0x16b   : > { %v3867_v46 = vadd.f32 %v2816_v45, %v2815_v43  ;;  %v3877_v19 = vadd.f32 %v2768_v14, %v2767_v11  ;;  %v1507_v40 = vpop.permute.xlu1 %1506 }
 0x16f   : > { %v2834_v55 = vpop.f32.mrb[32].mxu1 }
 0x170   : > { %v2835_v59 = vpop.f32.mrb[33].mxu1 }
 0x171   : > { %v2836_v61 = vadd.f32 %v2835_v59, %v2834_v55  ;;  %v2837_v63 = vpop.f32.mrb[34].mxu1 }
 0x172   : > { %v2838_v0 = vpop.f32.mrb[35].mxu1 }
 0x173   : > { %v1195_v2 = vadd.f32 %v2836_v61, %v3821_v32  ;;  %v2839_v3 = vadd.f32 %v2838_v0, %v2837_v63  ;;  %v1512_v0 = vpop.permute.xlu0 %1511 }
 0x175   : > { %v1198_v7 = vadd.f32 %v2839_v3, %v3823_v36  ;;  %v1649_v15 = vmul.f32 %v1492_v58, %v1195_v2 }
 0x177   : > { %v1650_v17 = vmul.f32 %v1497_v12, %v1198_v7  ;;  %v2840_v18 = vpop.f32.mrb[36].mxu1  ;;  %v3274_v7 = vld [vmem:[%s3805_s17 + $0x18] sm:$0xff]  }
 0x178   : > { %v2841_v25 = vpop.f32.mrb[37].mxu1 }
 0x179   : > { %v1681_v32 = vpack.c.bf16 %v1650_v17, %v1649_v15  ;;  %v2842_v30 = vadd.f32 %v2841_v25, %v2840_v18  ;;  %v2843_v31 = vpop.f32.mrb[38].mxu1 }
 0x17a   : > { %v2844_v34 = vpop.f32.mrb[39].mxu1 }
 0x17b   : > { %v1203_v36 = vadd.f32 %v2842_v30, %v3829_v44  ;;  %v2845_v35 = vadd.f32 %v2844_v34, %v2843_v31  ;;  %1961 = vmatmul.mubr.bf16.vlgmr.msra.gmra.mrb[32].mxu0 %v1681_v32  ;;  %v3275_v31 = vld [vmem:[%s3805_s17 + $0x20] sm:$0xff]  }
 0x17c   : > { %1968 = vmatprep.mubr.bf16.mxu0 %v3272_v27 }
 0x17d   : > { %v1206_v37 = vadd.f32 %v2845_v35, %v3831_v48  ;;  %v1651_v43 = vmul.f32 %v1502_v22, %v1203_v36  ;;  %v1517_v48 = vpop.permute.xlu1 %1516 }
 0x17f   : > { %v1652_v45 = vmul.f32 %v1507_v40, %v1206_v37  ;;  %v2846_v47 = vpop.f32.mrb[40].mxu1 }
 0x180   : > { %v2847_v49 = vpop.f32.mrb[41].mxu1 }
 0x181   : > { %v2848_v54 = vadd.f32 %v2847_v49, %v2846_v47  ;;  %v2849_v55 = vpop.f32.mrb[42].mxu1  ;;  %v1682_v58 = vpack.c.bf16 %v1652_v45, %v1651_v43  ;;  %v1527_v22 = vpop.permute.xlu1 %1526 }
 0x182   : > { %v2850_v59 = vpop.f32.mrb[43].mxu1 }
 0x183   : > { %v1211_v61 = vadd.f32 %v2848_v54, %v3837_v56  ;;  %v2851_v63 = vadd.f32 %v2850_v59, %v2849_v55  ;;  %1969 = vmatmul.mubr.bf16.gmra.mrb[36].mxu0 %v1682_v58  ;;  %v3276_v55 = vld [vmem:[%s3805_s17 + $0x28] sm:$0xff]  }
 0x184   : > { %1976 = vmatprep.mubr.bf16.mxu0 %v3273_v52 }
 0x185   : > { %v1214_v44 = vadd.f32 %v2851_v63, %v3839_v60  ;;  %v1653_v2 = vmul.f32 %v1512_v0, %v1211_v61  ;;  %v1522_v60 = vpop.permute.xlu0 %1521  ;;  %v1537_v45 = vpop.permute.xlu1 %1536 }
 0x187   : > { %v1654_v3 = vmul.f32 %v1517_v48, %v1214_v44  ;;  %v2852_v5 = vpop.f32.mrb[44].mxu1 }
 0x188   : > { %v2853_v6 = vpop.f32.mrb[45].mxu1 }
 0x189   : > { %v2854_v11 = vadd.f32 %v2853_v6, %v2852_v5  ;;  %v2855_v12 = vpop.f32.mrb[46].mxu1  ;;  %v1683_v14 = vpack.c.bf16 %v1654_v3, %v1653_v2  ;;  %v1547_v48 = vpop.permute.xlu1 %1546 }
 0x18a   : > { %v2856_v15 = vpop.f32.mrb[47].mxu1 }
 0x18b   : > { %v1219_v17 = vadd.f32 %v2854_v11, %v3845_v4  ;;  %v2857_v56 = vadd.f32 %v2856_v15, %v2855_v12  ;;  %1977 = vmatmul.mubr.bf16.gmra.mrb[40].mxu0 %v1683_v14 }
 0x18c   : > { %1984 = vmatprep.mubr.bf16.mxu0 %v3274_v7  ;;  %v3277_v7 = vld [vmem:[%s3805_s17 + $0x30] sm:$0xff]  }
 0x18d   : > { %v1222_v18 = vadd.f32 %v2857_v56, %v3847_v8  ;;  %v1655_v25 = vmul.f32 %v1522_v60, %v1219_v17  ;;  %v1532_v8 = vpop.permute.xlu0 %1531 }
 0x18f   : > { %v1656_v27 = vmul.f32 %v1527_v22, %v1222_v18  ;;  %v2858_v32 = vpop.f32.mrb[48].mxu1  ;;  %v1557_v18 = vpop.permute.xlu1 %1556 }
 0x190   : > { %v2859_v30 = vpop.f32.mrb[49].mxu1 }
 0x191   : > { %v2860_v34 = vadd.f32 %v2859_v30, %v2858_v32  ;;  %v2861_v36 = vpop.f32.mrb[50].mxu1  ;;  %v1684_v35 = vpack.c.bf16 %v1656_v27, %v1655_v25  ;;  %v3278_v32 = vld [vmem:[%s3805_s17 + $0x38] sm:$0xff]  }
 0x192   : > { %v2862_v37 = vpop.f32.mrb[51].mxu1 }
 0x193   : > { %v1227_v40 = vadd.f32 %v2860_v34, %v3853_v16  ;;  %v2863_v4 = vadd.f32 %v2862_v37, %v2861_v36  ;;  %1985 = vmatmul.mubr.bf16.gmra.mrb[44].mxu0 %v1684_v35 }
 0x194   : > { %1992 = vmatprep.mubr.bf16.mxu0 %v3275_v31 }
 0x195   : > { %v1230_v43 = vadd.f32 %v2863_v4, %v3855_v21  ;;  %v1657_v47 = vmul.f32 %v1532_v8, %v1227_v40  ;;  %v1542_v21 = vpop.permute.xlu0 %1541  ;;  %v1567_v40 = vpop.permute.xlu1 %1566 }
 0x197   : > { %v1658_v49 = vmul.f32 %v1537_v45, %v1230_v43  ;;  %v2864_v52 = vpop.f32.mrb[52].mxu1 }
 0x198   : > { %v2865_v54 = vpop.f32.mrb[53].mxu1 }
 0x199   : > { %v2866_v58 = vadd.f32 %v2865_v54, %v2864_v52  ;;  %v2867_v59 = vpop.f32.mrb[54].mxu1  ;;  %v1685_v61 = vpack.c.bf16 %v1658_v49, %v1657_v47  ;;  %v3279_v47 = vld [vmem:[%s3805_s17 + $0x40] sm:$0xff]  }
 0x19a   : > { %v2868_v63 = vpop.f32.mrb[55].mxu1 }
 0x19b   : > { %v1235_v44 = vadd.f32 %v2866_v58, %v3861_v33  ;;  %v2869_v16 = vadd.f32 %v2868_v63, %v2867_v59  ;;  %1993 = vmatmul.mubr.bf16.gmra.mrb[48].mxu0 %v1685_v61  ;;  %v1577_v61 = vpop.permute.xlu1 %1576 }
 0x19c   : > { %2000 = vmatprep.mubr.bf16.mxu0 %v3276_v55 }
 0x19d   : > { %v1238_v0 = vadd.f32 %v2869_v16, %v3863_v39  ;;  %v1659_v2 = vmul.f32 %v1542_v21, %v1235_v44  ;;  %v1552_v39 = vpop.permute.xlu0 %1551  ;;  %v3280_v21 = vld [vmem:[%s3805_s17 + $0x48] sm:$0xff]  }
 0x19f   : > { %v1660_v3 = vmul.f32 %v1547_v48, %v1238_v0  ;;  %v2870_v5 = vpop.f32.mrb[56].mxu1 }
 0x1a0   : > { %v2871_v6 = vpop.f32.mrb[57].mxu1 }
 0x1a1   : > { %v2872_v11 = vadd.f32 %v2871_v6, %v2870_v5  ;;  %v2873_v12 = vpop.f32.mrb[58].mxu1  ;;  %v1686_v14 = vpack.c.bf16 %v1660_v3, %v1659_v2 }
 0x1a2   : > { %v2874_v15 = vpop.f32.mrb[59].mxu1 }
 0x1a3   : > { %v1243_v17 = vadd.f32 %v2872_v11, %v3869_v51  ;;  %v2875_v33 = vadd.f32 %v2874_v15, %v2873_v12  ;;  %2001 = vmatmul.mubr.bf16.gmra.mrb[52].mxu0 %v1686_v14  ;;  %v1587_v11 = vpop.permute.xlu1 %1586 }
 0x1a4   : > { %2008 = vmatprep.mubr.bf16.mxu0 %v3277_v7 }
 0x1a5   : > { %v1246_v56 = vadd.f32 %v2875_v33, %v3871_v57  ;;  %v1661_v60 = vmul.f32 %v1552_v39, %v1243_v17  ;;  %v1562_v57 = vpop.permute.xlu0 %1561  ;;  %v3281_v33 = vld [vmem:[%s3805_s17 + $0x50] sm:$0xff]  }
 0x1a7   : > { %v1662_v22 = vmul.f32 %v1557_v18, %v1246_v56  ;;  %v2876_v25 = vpop.f32.mrb[60].mxu1 }
 0x1a8   : > { %v2877_v27 = vpop.f32.mrb[61].mxu1 }
 0x1a9   : > { %v2878_v30 = vadd.f32 %v2877_v27, %v2876_v25  ;;  %v2879_v31 = vpop.f32.mrb[62].mxu1  ;;  %v1687_v34 = vpack.c.bf16 %v1662_v22, %v1661_v60  ;;  %v1597_v27 = vpop.permute.xlu1 %1596 }
 0x1aa   : > { %v2880_v36 = vpop.f32.mrb[63].mxu1 }
 0x1ab   : > { %v1251_v35 = vadd.f32 %v2878_v30, %v3875_v9  ;;  %v2881_v51 = vadd.f32 %v2880_v36, %v2879_v31  ;;  %2009 = vmatmul.mubr.bf16.gmra.mrb[56].mxu0 %v1687_v34  ;;  %v3282_v36 = vld [vmem:[%s3805_s17 + $0x58] sm:$0xff]  }
 0x1ac   : > { %2016 = vmatprep.mubr.bf16.mxu0 %v3278_v32 }
 0x1ad   : > { %v1254_v37 = vadd.f32 %v2881_v51, %v3877_v19  ;;  %v1663_v4 = vmul.f32 %v1562_v57, %v1251_v35  ;;  %v1572_v19 = vpop.permute.xlu0 %1571 }
 0x1af   : > { %v1664_v43 = vmul.f32 %v1567_v40, %v1254_v37  ;;  %v2882_v8 = vpop.f32.mrb[64].mxu1 }
 0x1b0   : > { %v2883_v45 = vpop.f32.mrb[65].mxu1 }
 0x1b1   : > { %v2884_v49 = vadd.f32 %v2883_v45, %v2882_v8  ;;  %v2885_v52 = vpop.f32.mrb[66].mxu1  ;;  %v1688_v54 = vpack.c.bf16 %v1664_v43, %v1663_v4  ;;  %v1607_v43 = vpop.permute.xlu1 %1606 }
 0x1b2   : > { %v2886_v55 = vpop.f32.mrb[67].mxu1 }
 0x1b3   : > { %v1259_v58 = vadd.f32 %v2884_v49, %v3813_v20  ;;  %v2887_v9 = vadd.f32 %v2886_v55, %v2885_v52  ;;  %2017 = vmatmul.mubr.bf16.gmra.mrb[60].mxu0 %v1688_v54  ;;  %v3283_v52 = vld [vmem:[%s3805_s17 + $0x60] sm:$0xff]  }
 0x1b4   : > { %2024 = vmatprep.mubr.bf16.mxu0 %v3279_v47 }
 0x1b5   : > { %v1262_v59 = vadd.f32 %v2887_v9, %v3815_v23  ;;  %v1665_v63 = vmul.f32 %v1572_v19, %v1259_v58  ;;  %v1582_v23 = vpop.permute.xlu0 %1581 }
 0x1b7   : > { %v1666_v44 = vmul.f32 %v1577_v61, %v1262_v59  ;;  %v2888_v16 = vpop.f32.mrb[68].mxu1  ;;  %v1617_v61 = vpop.permute.xlu1 %1616 }
 0x1b8   : > { %v2889_v0 = vpop.f32.mrb[69].mxu1 }
 0x1b9   : > { %v2890_v48 = vadd.f32 %v2889_v0, %v2888_v16  ;;  %v2891_v2 = vpop.f32.mrb[70].mxu1  ;;  %v1689_v3 = vpack.c.bf16 %v1666_v44, %v1665_v63 }
 0x1ba   : > { %v2892_v5 = vpop.f32.mrb[71].mxu1 }
 0x1bb   : > { %v1267_v6 = vadd.f32 %v2890_v48, %v3817_v26  ;;  %v2893_v20 = vadd.f32 %v2892_v5, %v2891_v2  ;;  %2025 = vmatmul.mubr.bf16.gmra.mrb[64].mxu0 %v1689_v3 }
 0x1bc   : > { %2032 = vmatprep.mubr.bf16.mxu0 %v3280_v21  ;;  %v3284_v21 = vld [vmem:[%s3805_s17 + $0x68] sm:$0xff]  }
 0x1bd   : > { %v1270_v7 = vadd.f32 %v2893_v20, %v3819_v29  ;;  %v1667_v12 = vmul.f32 %v1582_v23, %v1267_v6  ;;  %v1592_v29 = vpop.permute.xlu0 %1591 }
 0x1bf   : > { %v1668_v14 = vmul.f32 %v1587_v11, %v1270_v7  ;;  %v2894_v15 = vpop.f32.mrb[72].mxu1  ;;  %v1627_v7 = vpop.permute.xlu1 %1626 }
 0x1c0   : > { %v2895_v17 = vpop.f32.mrb[73].mxu1 }
 0x1c1   : > { %v2896_v56 = vadd.f32 %v2895_v17, %v2894_v15  ;;  %v2897_v39 = vpop.f32.mrb[74].mxu1  ;;  %v1690_v18 = vpack.c.bf16 %v1668_v14, %v1667_v12  ;;  %v3285_v15 = vld [vmem:[%s3805_s17 + $0x70] sm:$0xff]  }
 0x1c2   : > { %v2898_v60 = vpop.f32.mrb[75].mxu1 }
 0x1c3   : > { %v1275_v22 = vadd.f32 %v2896_v56, %v3825_v38  ;;  %v2899_v26 = vadd.f32 %v2898_v60, %v2897_v39  ;;  %2033 = vmatmul.mubr.bf16.gmra.mrb[68].mxu0 %v1690_v18 }
 0x1c4   : > { %2040 = vmatprep.mubr.bf16.mxu0 %v3281_v33 }
 0x1c5   : > { %v1278_v25 = vadd.f32 %v2899_v26, %v3827_v41  ;;  %v1669_v32 = vmul.f32 %v1592_v29, %v1275_v22  ;;  %v1602_v41 = vpop.permute.xlu0 %1601  ;;  %v1637_v22 = vpop.permute.xlu1 %1636 }
 0x1c7   : > { %v1670_v30 = vmul.f32 %v1597_v27, %v1278_v25  ;;  %v2900_v31 = vpop.f32.mrb[76].mxu1 }
 0x1c8   : > { %v2901_v34 = vpop.f32.mrb[77].mxu1 }
 0x1c9   : > { %v2902_v35 = vadd.f32 %v2901_v34, %v2900_v31  ;;  %v2903_v51 = vpop.f32.mrb[78].mxu1  ;;  %v1691_v37 = vpack.c.bf16 %v1670_v30, %v1669_v32  ;;  %v3286_v32 = vld [vmem:[%s3805_s17 + $0x78] sm:$0xff]  }
 0x1ca   : > { %v2904_v57 = vpop.f32.mrb[79].mxu1 }
 0x1cb   : > { %v1283_v40 = vadd.f32 %v2902_v35, %v3833_v50  ;;  %v2905_v38 = vadd.f32 %v2904_v57, %v2903_v51  ;;  %2041 = vmatmul.mubr.bf16.gmra.mrb[72].mxu0 %v1691_v37  ;;  %v1647_v37 = vpop.permute.xlu1 %1646 }
 0x1cc   : > { %2048 = vmatprep.mubr.bf16.mxu0 %v3282_v36 }
 0x1cd   : > { %v1286_v4 = vadd.f32 %v2905_v38, %v3835_v53  ;;  %v1671_v8 = vmul.f32 %v1602_v41, %v1283_v40  ;;  %v1612_v53 = vpop.permute.xlu0 %1611  ;;  %v3927_v41 = vld [vmem:[%s4040_s4] ss:$0 sm:$0xff] }
 0x1cf   : > { %v1672_v45 = vmul.f32 %v1607_v43, %v1286_v4  ;;  %v2906_v47 = vpop.f32.mrb[80].mxu1 }
 0x1d0   : > { %v2907_v49 = vpop.f32.mrb[81].mxu1 }
 0x1d1   : > { %v2908_v54 = vadd.f32 %v2907_v49, %v2906_v47  ;;  %v2909_v55 = vpop.f32.mrb[82].mxu1  ;;  %v1692_v58 = vpack.c.bf16 %v1672_v45, %v1671_v8 }
 0x1d2   : > { %v2910_v9 = vpop.f32.mrb[83].mxu1 }
 0x1d3   : > { %v1291_v59 = vadd.f32 %v2908_v54, %v3841_v62  ;;  %v2911_v50 = vadd.f32 %v2910_v9, %v2909_v55  ;;  %2049 = vmatmul.mubr.bf16.gmra.mrb[76].mxu0 %v1692_v58 }
 0x1d4   : > { %2056 = vmatprep.mubr.bf16.mxu0 %v3283_v52 }
 0x1d5   : > { %v1294_v19 = vadd.f32 %v2911_v50, %v3843_v1  ;;  %v1673_v63 = vmul.f32 %v1612_v53, %v1291_v59  ;;  %v1622_v1 = vpop.permute.xlu0 %1621 }
 0x1d7   : > { %v1674_v44 = vmul.f32 %v1617_v61, %v1294_v19  ;;  %v2912_v16 = vpop.f32.mrb[84].mxu1 }
 0x1d8   : > { %v2913_v0 = vpop.f32.mrb[85].mxu1 }
 0x1d9   : > { %v2914_v48 = vadd.f32 %v2913_v0, %v2912_v16  ;;  %v2915_v2 = vpop.f32.mrb[86].mxu1  ;;  %v1693_v3 = vpack.c.bf16 %v1674_v44, %v1673_v63 }
 0x1da   : > { %v2916_v5 = vpop.f32.mrb[87].mxu1 }
 0x1db   : > { %v1299_v6 = vadd.f32 %v2914_v48, %v3849_v10  ;;  %v2917_v62 = vadd.f32 %v2916_v5, %v2915_v2  ;;  %2057 = vmatmul.mubr.bf16.gmra.mrb[80].mxu0 %v1693_v3 }
 0x1dc   : > { %2064 = vmatprep.mubr.bf16.mxu0 %v3284_v21 }
 0x1dd   : > { %v1302_v20 = vadd.f32 %v2917_v62, %v3851_v13  ;;  %v1675_v23 = vmul.f32 %v1622_v1, %v1299_v6  ;;  %v1632_v13 = vpop.permute.xlu0 %1631 }
 0x1df   : > { %v1676_v11 = vmul.f32 %v1627_v7, %v1302_v20  ;;  %v2918_v12 = vpop.f32.mrb[88].mxu1 }
 0x1e0   : > { %v2919_v14 = vpop.f32.mrb[89].mxu1 }
 0x1e1   : > { %v2920_v17 = vadd.f32 %v2919_v14, %v2918_v12  ;;  %v2921_v33 = vpop.f32.mrb[90].mxu1  ;;  %v1694_v56 = vpack.c.bf16 %v1676_v11, %v1675_v23 }
 0x1e2   : > { %v2922_v39 = vpop.f32.mrb[91].mxu1 }
 0x1e3   : > { %v1307_v18 = vadd.f32 %v2920_v17, %v3857_v24  ;;  %v2923_v10 = vadd.f32 %v2922_v39, %v2921_v33  ;;  %2065 = vmatmul.mubr.bf16.gmra.mrb[84].mxu0 %v1694_v56 }
 0x1e4   : > { %2072 = vmatprep.mubr.bf16.mxu0 %v3285_v15 }
 0x1e5   : > { %v1310_v60 = vadd.f32 %v2923_v10, %v3859_v28  ;;  %v1677_v26 = vmul.f32 %v1632_v13, %v1307_v18  ;;  %v1642_v28 = vpop.permute.xlu0 %1641 }
 0x1e7   : > { %v1678_v25 = vmul.f32 %v1637_v22, %v1310_v60  ;;  %v2924_v29 = vpop.f32.mrb[92].mxu1 }
 0x1e8   : > { %v2925_v27 = vpop.f32.mrb[93].mxu1 }
 0x1e9   : > { %v2926_v30 = vadd.f32 %v2925_v27, %v2924_v29  ;;  %v2927_v31 = vpop.f32.mrb[94].mxu1  ;;  %v1695_v34 = vpack.c.bf16 %v1678_v25, %v1677_v26 }
 0x1ea   : > { %v2928_v36 = vpop.f32.mrb[95].mxu1 }
 0x1eb   : > { %v1315_v35 = vadd.f32 %v2926_v30, %v3865_v42  ;;  %v2929_v51 = vadd.f32 %v2928_v36, %v2927_v31  ;;  %2073 = vmatmul.mubr.bf16.gmra.mrb[88].mxu0 %v1695_v34 }
 0x1ec   : > { %2080 = vmatprep.mubr.bf16.mxu0 %v3286_v32 }
 0x1ed   : > { %v1318_v24 = vadd.f32 %v2929_v51, %v3867_v46  ;;  %v1679_v57 = vmul.f32 %v1642_v28, %v1315_v35 }
 0x1ef   : > { %v1680_v40 = vmul.f32 %v1647_v37, %v1318_v24 }
 0x1f1   : > { %v1696_v38 = vpack.c.bf16 %v1680_v40, %v1679_v57 }
 0x1f3   : > { %2081 = vmatmul.mubr.bf16.gmra.mrb[92].mxu0 %v1696_v38 }
 0x24e   : > { %v2946_v4 = vpop.f32.mrb[32].mxu0 }
 0x24f   : > { %v2947_v43 = vpop.f32.mrb[33].mxu0 }
 0x250   : > { %v2948_v42 = vadd.f32 %v2947_v43, %v2946_v4  ;;  %v2949_v8 = vpop.f32.mrb[34].mxu0 }
 0x251   : > { %v2950_v45 = vpop.f32.mrb[35].mxu0 }
 0x252   : > { %v1963_v47 = vadd.f32 %v2948_v42, %v3927_v41  ;;  %v2951_v49 = vadd.f32 %v2950_v45, %v2949_v8 }
 0x254   : > { %v1966_v46 = vadd.f32 %v2951_v49, %v3927_v41  ;;  %v2089_v52 = vmax.f32 %v1963_v47, 0.0 }
 0x256   : > { %v2090_v54 = vmax.f32 %v1966_v46, 0.0  ;;  %v2952_v55 = vpop.f32.mrb[36].mxu0 }
 0x257   : > { %v2953_v58 = vpop.f32.mrb[37].mxu0 }
 0x258   : > { %v2614_v9 = vpack.c.bf16 %v2090_v54, %v2089_v52  ;;  %v2954_v59 = vadd.f32 %v2953_v58, %v2952_v55  ;;  %v2955_v50 = vpop.f32.mrb[38].mxu0 }
 0x259   : > { %v2956_v19 = vpop.f32.mrb[39].mxu0 }
 0x25a   : > { %2615 = vst [vmem:[%s3932_s30] sm:$0xff] %v2614_v9   ;;  %v1971_v53 = vadd.f32 %v2954_v59, %v3927_v41  ;;  %v2957_v61 = vadd.f32 %v2956_v19, %v2955_v50 }
 0x25c   : > { %v1974_v63 = vadd.f32 %v2957_v61, %v3927_v41  ;;  %v2091_v44 = vmax.f32 %v1971_v53, 0.0 }
 0x25e   : > { %v2092_v16 = vmax.f32 %v1974_v63, 0.0  ;;  %v2958_v0 = vpop.f32.mrb[40].mxu0 }
 0x25f   : > { %v2959_v21 = vpop.f32.mrb[41].mxu0 }
 0x260   : > { %v2619_v48 = vpack.c.bf16 %v2092_v16, %v2091_v44  ;;  %v2960_v2 = vadd.f32 %v2959_v21, %v2958_v0  ;;  %v2961_v3 = vpop.f32.mrb[42].mxu0 }
 0x261   : > { %v2962_v5 = vpop.f32.mrb[43].mxu0 }
 0x262   : > { %2691 = vst [vmem:[%s3932_s30 + $0x8] sm:$0xff] %v2619_v48   ;;  %v1979_v6 = vadd.f32 %v2960_v2, %v3927_v41  ;;  %v2963_v62 = vadd.f32 %v2962_v5, %v2961_v3 }
 0x264   : > { %v1982_v20 = vadd.f32 %v2963_v62, %v3927_v41  ;;  %v2093_v1 = vmax.f32 %v1979_v6, 0.0 }
 0x266   : > { %v2094_v7 = vmax.f32 %v1982_v20, 0.0  ;;  %v2964_v23 = vpop.f32.mrb[44].mxu0 }
 0x267   : > { %v2965_v11 = vpop.f32.mrb[45].mxu0 }
 0x268   : > { %v2624_v12 = vpack.c.bf16 %v2094_v7, %v2093_v1  ;;  %v2966_v14 = vadd.f32 %v2965_v11, %v2964_v23  ;;  %v2967_v15 = vpop.f32.mrb[46].mxu0 }
 0x269   : > { %v2968_v17 = vpop.f32.mrb[47].mxu0 }
 0x26a   : > { %2692 = vst [vmem:[%s3932_s30 + $0x10] sm:$0xff] %v2624_v12   ;;  %v1987_v33 = vadd.f32 %v2966_v14, %v3927_v41  ;;  %v2969_v56 = vadd.f32 %v2968_v17, %v2967_v15 }
 0x26c   : > { %v1990_v39 = vadd.f32 %v2969_v56, %v3927_v41  ;;  %v2095_v18 = vmax.f32 %v1987_v33, 0.0 }
 0x26e   : > { %v2096_v10 = vmax.f32 %v1990_v39, 0.0  ;;  %v2970_v60 = vpop.f32.mrb[48].mxu0 }
 0x26f   : > { %v2971_v13 = vpop.f32.mrb[49].mxu0 }
 0x270   : > { %v2629_v22 = vpack.c.bf16 %v2096_v10, %v2095_v18  ;;  %v2972_v26 = vadd.f32 %v2971_v13, %v2970_v60  ;;  %v2973_v25 = vpop.f32.mrb[50].mxu0 }
 0x271   : > { %v2974_v29 = vpop.f32.mrb[51].mxu0 }
 0x272   : > { %2693 = vst [vmem:[%s3932_s30 + $0x18] sm:$0xff] %v2629_v22   ;;  %v1995_v27 = vadd.f32 %v2972_v26, %v3927_v41  ;;  %v2975_v32 = vadd.f32 %v2974_v29, %v2973_v25 }
 0x274   : > { %v1998_v30 = vadd.f32 %v2975_v32, %v3927_v41  ;;  %v2097_v31 = vmax.f32 %v1995_v27, 0.0 }
 0x276   : > { %v2098_v34 = vmax.f32 %v1998_v30, 0.0  ;;  %v2976_v36 = vpop.f32.mrb[52].mxu0 }
 0x277   : > { %v2977_v35 = vpop.f32.mrb[53].mxu0 }
 0x278   : > { %v2634_v51 = vpack.c.bf16 %v2098_v34, %v2097_v31  ;;  %v2978_v24 = vadd.f32 %v2977_v35, %v2976_v36  ;;  %v2979_v28 = vpop.f32.mrb[54].mxu0 }
 0x279   : > { %v2980_v37 = vpop.f32.mrb[55].mxu0 }
 0x27a   : > { %2694 = vst [vmem:[%s3932_s30 + $0x20] sm:$0xff] %v2634_v51   ;;  %v2003_v57 = vadd.f32 %v2978_v24, %v3927_v41  ;;  %v2981_v40 = vadd.f32 %v2980_v37, %v2979_v28 }
 0x27c   : > { %v2006_v38 = vadd.f32 %v2981_v40, %v3927_v41  ;;  %v2099_v4 = vmax.f32 %v2003_v57, 0.0 }
 0x27e   : > { %v2100_v43 = vmax.f32 %v2006_v38, 0.0  ;;  %v2982_v42 = vpop.f32.mrb[56].mxu0 }
 0x27f   : > { %v2983_v8 = vpop.f32.mrb[57].mxu0 }
 0x280   : > { %v2639_v45 = vpack.c.bf16 %v2100_v43, %v2099_v4  ;;  %v2984_v47 = vadd.f32 %v2983_v8, %v2982_v42  ;;  %v2985_v49 = vpop.f32.mrb[58].mxu0 }
 0x281   : > { %v2986_v46 = vpop.f32.mrb[59].mxu0 }
 0x282   : > { %2695 = vst [vmem:[%s3932_s30 + $0x28] sm:$0xff] %v2639_v45   ;;  %v2011_v52 = vadd.f32 %v2984_v47, %v3927_v41  ;;  %v2987_v54 = vadd.f32 %v2986_v46, %v2985_v49 }
 0x284   : > { %v2014_v55 = vadd.f32 %v2987_v54, %v3927_v41  ;;  %v2101_v58 = vmax.f32 %v2011_v52, 0.0 }
 0x286   : > { %v2102_v9 = vmax.f32 %v2014_v55, 0.0  ;;  %v2988_v59 = vpop.f32.mrb[60].mxu0 }
 0x287   : > { %v2989_v50 = vpop.f32.mrb[61].mxu0 }
 0x288   : > { %v2644_v19 = vpack.c.bf16 %v2102_v9, %v2101_v58  ;;  %v2990_v53 = vadd.f32 %v2989_v50, %v2988_v59  ;;  %v2991_v61 = vpop.f32.mrb[62].mxu0 }
 0x289   : > { %v2992_v63 = vpop.f32.mrb[63].mxu0 }
 0x28a   : > { %2696 = vst [vmem:[%s3932_s30 + $0x30] sm:$0xff] %v2644_v19   ;;  %v2019_v44 = vadd.f32 %v2990_v53, %v3927_v41  ;;  %v2993_v16 = vadd.f32 %v2992_v63, %v2991_v61 }
 0x28c   : > { %v2022_v0 = vadd.f32 %v2993_v16, %v3927_v41  ;;  %v2103_v21 = vmax.f32 %v2019_v44, 0.0 }
 0x28e   : > { %v2104_v48 = vmax.f32 %v2022_v0, 0.0  ;;  %v2994_v2 = vpop.f32.mrb[64].mxu0 }
 0x28f   : > { %v2995_v3 = vpop.f32.mrb[65].mxu0 }
 0x290   : > { %v2649_v5 = vpack.c.bf16 %v2104_v48, %v2103_v21  ;;  %v2996_v6 = vadd.f32 %v2995_v3, %v2994_v2  ;;  %v2997_v62 = vpop.f32.mrb[66].mxu0 }
 0x291   : > { %v2998_v20 = vpop.f32.mrb[67].mxu0 }
 0x292   : > { %2697 = vst [vmem:[%s3932_s30 + $0x38] sm:$0xff] %v2649_v5   ;;  %v2027_v1 = vadd.f32 %v2996_v6, %v3927_v41  ;;  %v2999_v7 = vadd.f32 %v2998_v20, %v2997_v62 }
 0x294   : > { %v2030_v23 = vadd.f32 %v2999_v7, %v3927_v41  ;;  %v2105_v11 = vmax.f32 %v2027_v1, 0.0 }
 0x296   : > { %v2106_v12 = vmax.f32 %v2030_v23, 0.0  ;;  %v3000_v14 = vpop.f32.mrb[68].mxu0 }
 0x297   : > { %v3001_v15 = vpop.f32.mrb[69].mxu0 }
 0x298   : > { %v2654_v17 = vpack.c.bf16 %v2106_v12, %v2105_v11  ;;  %v3002_v33 = vadd.f32 %v3001_v15, %v3000_v14  ;;  %v3003_v56 = vpop.f32.mrb[70].mxu0 }
 0x299   : > { %v3004_v39 = vpop.f32.mrb[71].mxu0 }
 0x29a   : > { %2698 = vst [vmem:[%s3932_s30 + $0x40] sm:$0xff] %v2654_v17   ;;  %v2035_v18 = vadd.f32 %v3002_v33, %v3927_v41  ;;  %v3005_v10 = vadd.f32 %v3004_v39, %v3003_v56 }
 0x29c   : > { %v2038_v60 = vadd.f32 %v3005_v10, %v3927_v41  ;;  %v2107_v13 = vmax.f32 %v2035_v18, 0.0 }
 0x29e   : > { %v2108_v22 = vmax.f32 %v2038_v60, 0.0  ;;  %v3006_v26 = vpop.f32.mrb[72].mxu0 }
 0x29f   : > { %v3007_v25 = vpop.f32.mrb[73].mxu0 }
 0x2a0   : > { %v2659_v29 = vpack.c.bf16 %v2108_v22, %v2107_v13  ;;  %v3008_v27 = vadd.f32 %v3007_v25, %v3006_v26  ;;  %v3009_v32 = vpop.f32.mrb[74].mxu0 }
 0x2a1   : > { %v3010_v30 = vpop.f32.mrb[75].mxu0 }
 0x2a2   : > { %2699 = vst [vmem:[%s3932_s30 + $0x48] sm:$0xff] %v2659_v29   ;;  %v2043_v31 = vadd.f32 %v3008_v27, %v3927_v41  ;;  %v3011_v34 = vadd.f32 %v3010_v30, %v3009_v32 }
 0x2a4   : > { %v2046_v36 = vadd.f32 %v3011_v34, %v3927_v41  ;;  %v2109_v35 = vmax.f32 %v2043_v31, 0.0 }
 0x2a6   : > { %v2110_v51 = vmax.f32 %v2046_v36, 0.0  ;;  %v3012_v24 = vpop.f32.mrb[76].mxu0 }
 0x2a7   : > { %v3013_v28 = vpop.f32.mrb[77].mxu0 }
 0x2a8   : > { %v2664_v37 = vpack.c.bf16 %v2110_v51, %v2109_v35  ;;  %v3014_v57 = vadd.f32 %v3013_v28, %v3012_v24  ;;  %v3015_v40 = vpop.f32.mrb[78].mxu0 }
 0x2a9   : > { %v3016_v38 = vpop.f32.mrb[79].mxu0 }
 0x2aa   : > { %2700 = vst [vmem:[%s3932_s30 + $0x50] sm:$0xff] %v2664_v37   ;;  %v2051_v4 = vadd.f32 %v3014_v57, %v3927_v41  ;;  %v3017_v43 = vadd.f32 %v3016_v38, %v3015_v40 }
 0x2ac   : > { %v2054_v42 = vadd.f32 %v3017_v43, %v3927_v41  ;;  %v2111_v8 = vmax.f32 %v2051_v4, 0.0 }
 0x2ae   : > { %v2112_v45 = vmax.f32 %v2054_v42, 0.0  ;;  %v3018_v47 = vpop.f32.mrb[80].mxu0 }
 0x2af   : > { %v3019_v49 = vpop.f32.mrb[81].mxu0 }
 0x2b0   : > { %v2669_v46 = vpack.c.bf16 %v2112_v45, %v2111_v8  ;;  %v3020_v52 = vadd.f32 %v3019_v49, %v3018_v47  ;;  %v3021_v54 = vpop.f32.mrb[82].mxu0 }
 0x2b1   : > { %v3022_v55 = vpop.f32.mrb[83].mxu0 }
 0x2b2   : > { %2701 = vst [vmem:[%s3932_s30 + $0x58] sm:$0xff] %v2669_v46   ;;  %v2059_v58 = vadd.f32 %v3020_v52, %v3927_v41  ;;  %v3023_v9 = vadd.f32 %v3022_v55, %v3021_v54 }
 0x2b4   : > { %v2062_v59 = vadd.f32 %v3023_v9, %v3927_v41  ;;  %v2113_v50 = vmax.f32 %v2059_v58, 0.0 }
 0x2b6   : > { %v2114_v19 = vmax.f32 %v2062_v59, 0.0  ;;  %v3024_v53 = vpop.f32.mrb[84].mxu0 }
 0x2b7   : > { %v3025_v61 = vpop.f32.mrb[85].mxu0 }
 0x2b8   : > { %v2674_v63 = vpack.c.bf16 %v2114_v19, %v2113_v50  ;;  %v3026_v44 = vadd.f32 %v3025_v61, %v3024_v53  ;;  %v3027_v16 = vpop.f32.mrb[86].mxu0 }
 0x2b9   : > { %v3028_v0 = vpop.f32.mrb[87].mxu0 }
 0x2ba   : > { %2702 = vst [vmem:[%s3932_s30 + $0x60] sm:$0xff] %v2674_v63   ;;  %v2067_v21 = vadd.f32 %v3026_v44, %v3927_v41  ;;  %v3029_v48 = vadd.f32 %v3028_v0, %v3027_v16 }
 0x2bc   : > { %v2070_v2 = vadd.f32 %v3029_v48, %v3927_v41  ;;  %v2115_v3 = vmax.f32 %v2067_v21, 0.0 }
 0x2be   : > { %v2116_v5 = vmax.f32 %v2070_v2, 0.0  ;;  %v3030_v6 = vpop.f32.mrb[88].mxu0 }
 0x2bf   : > { %v3031_v62 = vpop.f32.mrb[89].mxu0 }
 0x2c0   : > { %v2679_v20 = vpack.c.bf16 %v2116_v5, %v2115_v3  ;;  %v3032_v1 = vadd.f32 %v3031_v62, %v3030_v6  ;;  %v3033_v7 = vpop.f32.mrb[90].mxu0 }
 0x2c1   : > { %v3034_v23 = vpop.f32.mrb[91].mxu0 }
 0x2c2   : > { %2703 = vst [vmem:[%s3932_s30 + $0x68] sm:$0xff] %v2679_v20   ;;  %v2075_v11 = vadd.f32 %v3032_v1, %v3927_v41  ;;  %v3035_v12 = vadd.f32 %v3034_v23, %v3033_v7 }
 0x2c4   : > { %v2078_v14 = vadd.f32 %v3035_v12, %v3927_v41  ;;  %v2117_v15 = vmax.f32 %v2075_v11, 0.0 }
 0x2c6   : > { %v2118_v17 = vmax.f32 %v2078_v14, 0.0  ;;  %v3036_v33 = vpop.f32.mrb[92].mxu0 }
 0x2c7   : > { %v3037_v56 = vpop.f32.mrb[93].mxu0 }
 0x2c8   : > { %v2684_v39 = vpack.c.bf16 %v2118_v17, %v2117_v15  ;;  %v3038_v18 = vadd.f32 %v3037_v56, %v3036_v33  ;;  %v3039_v10 = vpop.f32.mrb[94].mxu0 }
 0x2c9   : > { %v3040_v60 = vpop.f32.mrb[95].mxu0 }
 0x2ca   : > { %2704 = vst [vmem:[%s3932_s30 + $0x70] sm:$0xff] %v2684_v39   ;;  %v2083_v13 = vadd.f32 %v3038_v18, %v3927_v41  ;;  %v3041_v22 = vadd.f32 %v3040_v60, %v3039_v10 }
 0x2cc   : > { %v2086_v26 = vadd.f32 %v3041_v22, %v3927_v41  ;;  %v2119_v25 = vmax.f32 %v2083_v13, 0.0 }
 0x2ce   : > { %v2120_v29 = vmax.f32 %v2086_v26, 0.0 }
 0x2d0   : > { %v2689_v27 = vpack.c.bf16 %v2120_v29, %v2119_v25 }
 0x2d2   : > { %2705 = vst [vmem:[%s3932_s30 + $0x78] sm:$0xff] %v2689_v27  }
 0x2d3   : > { %3330 = shalt.err (!%p3327_p4)
}
 0x2d4   : > { %s3331_s17 = scalar_lea.hbm %s3984_s27, 2048  ;;  %s3335_s12 = scalar_lea.hbm %s4041_s5, 4096 }
 0x2d5   : > { %p3332_p7 = scmp.ne.s32.totalorder %s3984_s27, %s3331_s17  ;;  %p3336_p1 = scmp.lt.u32.totalorder %s3984_s27, %s4041_s5 }
 0x2d6   : > { %p3337_p3 = scmp.lt.u32.totalorder %s3335_s12, %s3331_s17  ;;  %p3339_p9 = scmp.lt.u32.totalorder %s3331_s17, %s3984_s27 }
 0x2d7   : > { %p3333_p10 = pnand %p3332_p7, %p4049_p11 }
 0x2d8   : > { %p3338_p8 = por %p3337_p3, %p3336_p1 }
 0x2d9   : > { %p3334_p12 = pneg %p3333_p10 }
 0x2da   : > { %p3340_p0 = por %p3339_p9, %p3338_p8 }
 0x2dc   : > { %p3341_p6 = pnand %p3340_p0, %p3334_p12 }
 0x2de   : > { %3344 = shalt.err (!%p3341_p6)
}
 0x2df   : > { %s3406_s13 = smov 64   ;;  %s3407_s24 = smov 4  }
 0x2e0   : > { %3060 = dma.vmem_to_hbm [thread:$0]  (%p4049_p11), %s3986_s25, 2048, %s3984_s27, %s2282_s28, %s3406_s13, %s3406_s13, %s3407_s24  }
 0x2e1 PF: > { %s2310_s10 = sand.u32 1, %s3379_s18   ;;  %p4050_p13 = scmp.ne.s32.totalorder %s4046_s8, 0 }
 0x2e2   : > { %p4051_p2 = scmp.ge.s32.totalorder %s3399_s23, 2  ;;  %s2311_s21 = scalar_lea.sflag [#allocation5], %s2310_s10 }
 0x2e4   : > { %p3067_p5 = pnand %p4051_p2, %p4050_p13 }
 0x2e6   : > { %3374 = dma.done.wait (!%p3067_p5), %s2311_s21, 2048  }
 0x2e7   : > { %3376 = vsyncadd (!%p3067_p5), %s2311_s21, 4294965248  ;;  %s21_s23 = sadd.s32 1, %s3399_s23   ;;  %s4052_s18 = smov %s3383_s19 }
 0x2e8   : > { %p18_p4 = scmp.ge.s32.totalorder %s21_s23, 4   ;;  %s4053_s19 = smov %s3387_s20 }
 0x2e9   : > { %s4054_s20 = smov %s3494_s7  ;;  %s4055_s21 = smov %s3395_s22 }
 0x2ea   : > { %s4056_s22 = smov %s4058_s26  ;;  %20 = sbr.rel (!%p18_p4) target bundleno = 6 (0x6), region = 98 }
 0x2f1   :  { %2316 = vsyncpa [#allocation4], 1 }
 0x2f2   :  { %2318 = vsyncpa [#allocation4 + $0x1], 1 }
 0x2f3   :  { %2319 = vsyncpa [#allocation5], 1 }
 0x2f4   :  { %2321 = vsyncpa [#allocation5 + $0x1], 1 }

</bundles_post_ra>
